<compile_context>
chip_gen: v6e
topology: v6e:2x2x1
jax: 0.10.0
libtpu: 0.0.40
codegen_flags: <defaults>
</compile_context>

<pallas_src>
import functools

import jax
import jax.numpy as jnp
from jax.experimental import pallas as pl
from jax.experimental.pallas import tpu as pltpu


def _conv_bn_relu_kernel(x_ref, w_ref, scale_ref, shift_ref, o_ref, *,
                         kh, kw, stride, dilation, h_out, w_out):
    """One (batch, c_out-tile) block of fused Conv2d + BN + ReLU.

    x_ref:     (1, H_pad, W_pad, C_in)    padded NHWC input
    w_ref:     (KH*KW, C_in, C_out_t)     conv weights
    scale_ref: (1, C_out_t)               folded BN scale
    shift_ref: (1, C_out_t)               folded BN shift
    o_ref:     (1, H_out*W_out, C_out_t)  fused output
    """
    c_in = x_ref.shape[-1]
    c_out = o_ref.shape[-1]

    rows = (h_out - 1) * stride + 1
    cols = (w_out - 1) * stride + 1

    acc = jnp.zeros((h_out * w_out, c_out), jnp.float32)
    for i in range(kh):            # static unroll: KH*KW MXU matmuls
        for j in range(kw):
            r0 = i * dilation
            c0 = j * dilation
            patch = x_ref[0, r0:r0 + rows, c0:c0 + cols, :]
            if stride > 1:
                patch = patch[::stride, ::stride, :]
            patch2d = patch.reshape(h_out * w_out, c_in).astype(jnp.float32)
            acc = acc + jnp.dot(
                patch2d,
                w_ref[i * kw + j].astype(jnp.float32),
                preferred_element_type=jnp.float32,
            )

    # fused BatchNorm (inference) + ReLU epilogue
    y = jnp.maximum(acc * scale_ref[...] + shift_ref[...], 0.0)
    o_ref[...] = y[None].astype(o_ref.dtype)


def building_block(x, weight, *, gamma, beta, running_mean, running_var,
                   eps=1e-5, stride=1, dilation=1, padding=0,
                   conv_bias=None, groups=1, co_tile=None):
    """Pallas equivalent of BuildingBlock.forward (eval-mode BN).

    x:      (N, C_in, H, W)          NCHW, like PyTorch
    weight: (C_out, C_in, KH, KW)    like PyTorch Conv2d.weight
    returns (N, C_out, H_out, W_out)
    """
    assert groups == 1, "grouped conv not implemented"  # TODO(synk): groups>1
    n, c_in, h, w = x.shape
    c_out, c_in_w, kh, kw = weight.shape
    assert c_in_w == c_in

    h_out = (h + 2 * padding - dilation * (kh - 1) - 1) // stride + 1
    w_out = (w + 2 * padding - dilation * (kw - 1) - 1) // stride + 1

    # Fold BN (inference mode) and any conv bias into a per-channel scale/shift.
    scale = gamma / jnp.sqrt(running_var + eps)
    shift = beta - running_mean * scale
    if conv_bias is not None:
        shift = shift + conv_bias * scale
    scale2 = scale.reshape(1, c_out).astype(jnp.float32)
    shift2 = shift.reshape(1, c_out).astype(jnp.float32)

    # NHWC, spatially pre-padded input (channels in the lane dim).
    x_nhwc = jnp.transpose(x, (0, 2, 3, 1))
    x_pad = jnp.pad(
        x_nhwc, ((0, 0), (padding, padding), (padding, padding), (0, 0)))
    h_pad, w_pad = x_pad.shape[1], x_pad.shape[2]

    # Weights as (KH*KW, C_in, C_out) so each tap is a ready-to-use matmul RHS.
    w_k = jnp.transpose(weight, (2, 3, 1, 0)).reshape(kh * kw, c_in, c_out)

    if co_tile is None:
        co_tile = c_out if c_out <= 128 else 128
    assert c_out % co_tile == 0
    n_co = c_out // co_tile

    kernel = functools.partial(
        _conv_bn_relu_kernel, kh=kh, kw=kw, stride=stride,
        dilation=dilation, h_out=h_out, w_out=w_out)

    out_flat = pl.pallas_call(
        kernel,
        out_shape=jax.ShapeDtypeStruct((n, h_out * w_out, c_out), x.dtype),
        grid_spec=pltpu.PrefetchScalarGridSpec(
            num_scalar_prefetch=0,
            grid=(n, n_co),
            in_specs=[
                pl.BlockSpec((1, h_pad, w_pad, c_in), lambda i, j: (i, 0, 0, 0)),
                pl.BlockSpec((kh * kw, c_in, co_tile), lambda i, j: (0, 0, j)),
                pl.BlockSpec((1, co_tile), lambda i, j: (0, j)),
                pl.BlockSpec((1, co_tile), lambda i, j: (0, j)),
            ],
            out_specs=pl.BlockSpec((1, h_out * w_out, co_tile),
                                   lambda i, j: (i, 0, j)),
        ),
        compiler_params=pltpu.CompilerParams(
            dimension_semantics=("parallel", "parallel")),
    )(x_pad, w_k, scale2, shift2)

    # Back to PyTorch's NCHW.
    out = out_flat.reshape(n, h_out, w_out, c_out)
    return jnp.transpose(out, (0, 3, 1, 2))


def _reference(x, weight, conv_bias, gamma, beta, running_mean, running_var,
               eps, stride, dilation, padding):
    """Pure-JAX reference mirroring the PyTorch forward (eval-mode BN)."""
    out = jax.lax.conv_general_dilated(
        x, weight,
        window_strides=(stride, stride),
        padding=[(padding, padding), (padding, padding)],
        rhs_dilation=(dilation, dilation),
        dimension_numbers=("NCHW", "OIHW", "NCHW"))
    if conv_bias is not None:
        out = out + conv_bias[None, :, None, None]
    out = (out - running_mean[None, :, None, None]) / jnp.sqrt(
        running_var[None, :, None, None] + eps)
    out = out * gamma[None, :, None, None] + beta[None, :, None, None]
    return jnp.maximum(out, 0.0)


if __name__ == "__main__":
    N, C_IN, C_OUT, H, W = 2, 4, 8, 16, 16
    KH = KW = 3
    stride, dilation, padding = 1, 1, 1
    eps = 1e-5

    key = jax.random.PRNGKey(0)
    k1, k2, k3, k4, k5, k6 = jax.random.split(key, 6)

    x = jax.random.normal(k1, (N, C_IN, H, W), dtype=jnp.float32)
    weight = jax.random.normal(k2, (C_OUT, C_IN, KH, KW), dtype=jnp.float32) * 0.1
    gamma = jax.random.uniform(k3, (C_OUT,), minval=0.5, maxval=1.5,
                               dtype=jnp.float32)
    beta = jax.random.normal(k4, (C_OUT,), dtype=jnp.float32) * 0.1
    running_mean = jax.random.normal(k5, (C_OUT,), dtype=jnp.float32) * 0.1
    running_var = jax.random.uniform(k6, (C_OUT,), minval=0.5, maxval=1.5,
                                     dtype=jnp.float32)

    out = building_block(
        x, weight, gamma=gamma, beta=beta,
        running_mean=running_mean, running_var=running_var,
        eps=eps, stride=stride, dilation=dilation, padding=padding,
        conv_bias=None, groups=1)
    out = jax.block_until_ready(out)

    ref = _reference(x, weight, None, gamma, beta, running_mean, running_var,
                     eps, stride, dilation, padding)

    assert out.shape == (N, C_OUT, H, W), out.shape
    assert jnp.allclose(out, ref, atol=2e-3, rtol=2e-3), (
        "mismatch vs reference, max abs err = "
        f"{float(jnp.max(jnp.abs(out - ref)))}")

    print("KERNEL_OK")
</pallas_src>

<mosaic_0001>
module attributes {stable_mosaic.version = 11 : i64} {
  func.func @_conv_bn_relu_kernel(%arg0: i32, %arg1: i32, %arg2: memref<1x18x18x4xf32, #tpu.memory_space<vmem>>, %arg3: memref<9x4x8xf32, #tpu.memory_space<vmem>>, %arg4: memref<1x8xf32, #tpu.memory_space<vmem>>, %arg5: memref<1x8xf32, #tpu.memory_space<vmem>>, %arg6: memref<1x256x8xf32, #tpu.memory_space<vmem>>) attributes {dimension_semantics = [#tpu.dimension_semantics<parallel>, #tpu.dimension_semantics<parallel>], iteration_bounds = array<i64: 2, 1>, scalar_prefetch = 0 : i64, scratch_operands = 0 : i64, tpu.core_type = #tpu.core_type<tc>, window_params = [{transform_indices = @transform_0, window_bounds = array<i64: 1, 18, 18, 4>}, {transform_indices = @transform_1, window_bounds = array<i64: 9, 4, 8>}, {transform_indices = @transform_2, window_bounds = array<i64: 1, 8>}, {transform_indices = @transform_3, window_bounds = array<i64: 1, 8>}, {transform_indices = @transform_4, window_bounds = array<i64: 1, 256, 8>}]} {
    %cst = arith.constant 0.000000e+00 : f32
    %0 = vector.broadcast %cst : f32 to vector<256x8xf32>
    %c0 = arith.constant 0 : index
    %c0_0 = arith.constant 0 : index
    %c0_1 = arith.constant 0 : index
    %c0_2 = arith.constant 0 : index
    %1 = vector.load %arg2[%c0, %c0_0, %c0_1, %c0_2] : memref<1x18x18x4xf32, #tpu.memory_space<vmem>>, vector<1x16x16x4xf32>
    %2 = vector.shape_cast %1 : vector<1x16x16x4xf32> to vector<16x16x4xf32>
    %3 = vector.shape_cast %2 : vector<16x16x4xf32> to vector<256x4xf32>
    %c0_3 = arith.constant 0 : index
    %c0_4 = arith.constant 0 : index
    %c0_5 = arith.constant 0 : index
    %4 = vector.load %arg3[%c0_3, %c0_4, %c0_5] : memref<9x4x8xf32, #tpu.memory_space<vmem>>, vector<1x4x8xf32>
    %5 = vector.shape_cast %4 : vector<1x4x8xf32> to vector<4x8xf32>
    %cst_6 = arith.constant dense<0.000000e+00> : vector<256x8xf32>
    %6 = tpu.matmul %3, %5, %cst_6 {dimension_numbers = #tpu.dot_dimension_numbers<[1], [0], [0], [1], [0, 0, 1, 1], [], []>} : vector<256x4xf32>, vector<4x8xf32>, vector<256x8xf32> -> vector<256x8xf32>
    %7 = arith.addf %0, %6 : vector<256x8xf32>
    %c0_7 = arith.constant 0 : index
    %c0_8 = arith.constant 0 : index
    %c1 = arith.constant 1 : index
    %c0_9 = arith.constant 0 : index
    %8 = vector.load %arg2[%c0_7, %c0_8, %c1, %c0_9] : memref<1x18x18x4xf32, #tpu.memory_space<vmem>>, vector<1x16x16x4xf32>
    %9 = vector.shape_cast %8 : vector<1x16x16x4xf32> to vector<16x16x4xf32>
    %10 = vector.shape_cast %9 : vector<16x16x4xf32> to vector<256x4xf32>
    %c1_10 = arith.constant 1 : index
    %c0_11 = arith.constant 0 : index
    %c0_12 = arith.constant 0 : index
    %11 = vector.load %arg3[%c1_10, %c0_11, %c0_12] : memref<9x4x8xf32, #tpu.memory_space<vmem>>, vector<1x4x8xf32>
    %12 = vector.shape_cast %11 : vector<1x4x8xf32> to vector<4x8xf32>
    %cst_13 = arith.constant dense<0.000000e+00> : vector<256x8xf32>
    %13 = tpu.matmul %10, %12, %cst_13 {dimension_numbers = #tpu.dot_dimension_numbers<[1], [0], [0], [1], [0, 0, 1, 1], [], []>} : vector<256x4xf32>, vector<4x8xf32>, vector<256x8xf32> -> vector<256x8xf32>
    %14 = arith.addf %7, %13 : vector<256x8xf32>
    %c0_14 = arith.constant 0 : index
    %c0_15 = arith.constant 0 : index
    %c2 = arith.constant 2 : index
    %c0_16 = arith.constant 0 : index
    %15 = vector.load %arg2[%c0_14, %c0_15, %c2, %c0_16] : memref<1x18x18x4xf32, #tpu.memory_space<vmem>>, vector<1x16x16x4xf32>
    %16 = vector.shape_cast %15 : vector<1x16x16x4xf32> to vector<16x16x4xf32>
    %17 = vector.shape_cast %16 : vector<16x16x4xf32> to vector<256x4xf32>
    %c2_17 = arith.constant 2 : index
    %c0_18 = arith.constant 0 : index
    %c0_19 = arith.constant 0 : index
    %18 = vector.load %arg3[%c2_17, %c0_18, %c0_19] : memref<9x4x8xf32, #tpu.memory_space<vmem>>, vector<1x4x8xf32>
    %19 = vector.shape_cast %18 : vector<1x4x8xf32> to vector<4x8xf32>
    %cst_20 = arith.constant dense<0.000000e+00> : vector<256x8xf32>
    %20 = tpu.matmul %17, %19, %cst_20 {dimension_numbers = #tpu.dot_dimension_numbers<[1], [0], [0], [1], [0, 0, 1, 1], [], []>} : vector<256x4xf32>, vector<4x8xf32>, vector<256x8xf32> -> vector<256x8xf32>
    %21 = arith.addf %14, %20 : vector<256x8xf32>
    %c0_21 = arith.constant 0 : index
    %c1_22 = arith.constant 1 : index
    %c0_23 = arith.constant 0 : index
    %c0_24 = arith.constant 0 : index
    %22 = vector.load %arg2[%c0_21, %c1_22, %c0_23, %c0_24] : memref<1x18x18x4xf32, #tpu.memory_space<vmem>>, vector<1x16x16x4xf32>
    %23 = vector.shape_cast %22 : vector<1x16x16x4xf32> to vector<16x16x4xf32>
    %24 = vector.shape_cast %23 : vector<16x16x4xf32> to vector<256x4xf32>
    %c3 = arith.constant 3 : index
    %c0_25 = arith.constant 0 : index
    %c0_26 = arith.constant 0 : index
    %25 = vector.load %arg3[%c3, %c0_25, %c0_26] : memref<9x4x8xf32, #tpu.memory_space<vmem>>, vector<1x4x8xf32>
    %26 = vector.shape_cast %25 : vector<1x4x8xf32> to vector<4x8xf32>
    %cst_27 = arith.constant dense<0.000000e+00> : vector<256x8xf32>
    %27 = tpu.matmul %24, %26, %cst_27 {dimension_numbers = #tpu.dot_dimension_numbers<[1], [0], [0], [1], [0, 0, 1, 1], [], []>} : vector<256x4xf32>, vector<4x8xf32>, vector<256x8xf32> -> vector<256x8xf32>
    %28 = arith.addf %21, %27 : vector<256x8xf32>
    %c0_28 = arith.constant 0 : index
    %c1_29 = arith.constant 1 : index
    %c1_30 = arith.constant 1 : index
    %c0_31 = arith.constant 0 : index
    %29 = vector.load %arg2[%c0_28, %c1_29, %c1_30, %c0_31] : memref<1x18x18x4xf32, #tpu.memory_space<vmem>>, vector<1x16x16x4xf32>
    %30 = vector.shape_cast %29 : vector<1x16x16x4xf32> to vector<16x16x4xf32>
    %31 = vector.shape_cast %30 : vector<16x16x4xf32> to vector<256x4xf32>
    %c4 = arith.constant 4 : index
    %c0_32 = arith.constant 0 : index
    %c0_33 = arith.constant 0 : index
    %32 = vector.load %arg3[%c4, %c0_32, %c0_33] : memref<9x4x8xf32, #tpu.memory_space<vmem>>, vector<1x4x8xf32>
    %33 = vector.shape_cast %32 : vector<1x4x8xf32> to vector<4x8xf32>
    %cst_34 = arith.constant dense<0.000000e+00> : vector<256x8xf32>
    %34 = tpu.matmul %31, %33, %cst_34 {dimension_numbers = #tpu.dot_dimension_numbers<[1], [0], [0], [1], [0, 0, 1, 1], [], []>} : vector<256x4xf32>, vector<4x8xf32>, vector<256x8xf32> -> vector<256x8xf32>
    %35 = arith.addf %28, %34 : vector<256x8xf32>
    %c0_35 = arith.constant 0 : index
    %c1_36 = arith.constant 1 : index
    %c2_37 = arith.constant 2 : index
    %c0_38 = arith.constant 0 : index
    %36 = vector.load %arg2[%c0_35, %c1_36, %c2_37, %c0_38] : memref<1x18x18x4xf32, #tpu.memory_space<vmem>>, vector<1x16x16x4xf32>
    %37 = vector.shape_cast %36 : vector<1x16x16x4xf32> to vector<16x16x4xf32>
    %38 = vector.shape_cast %37 : vector<16x16x4xf32> to vector<256x4xf32>
    %c5 = arith.constant 5 : index
    %c0_39 = arith.constant 0 : index
    %c0_40 = arith.constant 0 : index
    %39 = vector.load %arg3[%c5, %c0_39, %c0_40] : memref<9x4x8xf32, #tpu.memory_space<vmem>>, vector<1x4x8xf32>
    %40 = vector.shape_cast %39 : vector<1x4x8xf32> to vector<4x8xf32>
    %cst_41 = arith.constant dense<0.000000e+00> : vector<256x8xf32>
    %41 = tpu.matmul %38, %40, %cst_41 {dimension_numbers = #tpu.dot_dimension_numbers<[1], [0], [0], [1], [0, 0, 1, 1], [], []>} : vector<256x4xf32>, vector<4x8xf32>, vector<256x8xf32> -> vector<256x8xf32>
    %42 = arith.addf %35, %41 : vector<256x8xf32>
    %c0_42 = arith.constant 0 : index
    %c2_43 = arith.constant 2 : index
    %c0_44 = arith.constant 0 : index
    %c0_45 = arith.constant 0 : index
    %43 = vector.load %arg2[%c0_42, %c2_43, %c0_44, %c0_45] : memref<1x18x18x4xf32, #tpu.memory_space<vmem>>, vector<1x16x16x4xf32>
    %44 = vector.shape_cast %43 : vector<1x16x16x4xf32> to vector<16x16x4xf32>
    %45 = vector.shape_cast %44 : vector<16x16x4xf32> to vector<256x4xf32>
    %c6 = arith.constant 6 : index
    %c0_46 = arith.constant 0 : index
    %c0_47 = arith.constant 0 : index
    %46 = vector.load %arg3[%c6, %c0_46, %c0_47] : memref<9x4x8xf32, #tpu.memory_space<vmem>>, vector<1x4x8xf32>
    %47 = vector.shape_cast %46 : vector<1x4x8xf32> to vector<4x8xf32>
    %cst_48 = arith.constant dense<0.000000e+00> : vector<256x8xf32>
    %48 = tpu.matmul %45, %47, %cst_48 {dimension_numbers = #tpu.dot_dimension_numbers<[1], [0], [0], [1], [0, 0, 1, 1], [], []>} : vector<256x4xf32>, vector<4x8xf32>, vector<256x8xf32> -> vector<256x8xf32>
    %49 = arith.addf %42, %48 : vector<256x8xf32>
    %c0_49 = arith.constant 0 : index
    %c2_50 = arith.constant 2 : index
    %c1_51 = arith.constant 1 : index
    %c0_52 = arith.constant 0 : index
    %50 = vector.load %arg2[%c0_49, %c2_50, %c1_51, %c0_52] : memref<1x18x18x4xf32, #tpu.memory_space<vmem>>, vector<1x16x16x4xf32>
    %51 = vector.shape_cast %50 : vector<1x16x16x4xf32> to vector<16x16x4xf32>
    %52 = vector.shape_cast %51 : vector<16x16x4xf32> to vector<256x4xf32>
    %c7 = arith.constant 7 : index
    %c0_53 = arith.constant 0 : index
    %c0_54 = arith.constant 0 : index
    %53 = vector.load %arg3[%c7, %c0_53, %c0_54] : memref<9x4x8xf32, #tpu.memory_space<vmem>>, vector<1x4x8xf32>
    %54 = vector.shape_cast %53 : vector<1x4x8xf32> to vector<4x8xf32>
    %cst_55 = arith.constant dense<0.000000e+00> : vector<256x8xf32>
    %55 = tpu.matmul %52, %54, %cst_55 {dimension_numbers = #tpu.dot_dimension_numbers<[1], [0], [0], [1], [0, 0, 1, 1], [], []>} : vector<256x4xf32>, vector<4x8xf32>, vector<256x8xf32> -> vector<256x8xf32>
    %56 = arith.addf %49, %55 : vector<256x8xf32>
    %c0_56 = arith.constant 0 : index
    %c2_57 = arith.constant 2 : index
    %c2_58 = arith.constant 2 : index
    %c0_59 = arith.constant 0 : index
    %57 = vector.load %arg2[%c0_56, %c2_57, %c2_58, %c0_59] : memref<1x18x18x4xf32, #tpu.memory_space<vmem>>, vector<1x16x16x4xf32>
    %58 = vector.shape_cast %57 : vector<1x16x16x4xf32> to vector<16x16x4xf32>
    %59 = vector.shape_cast %58 : vector<16x16x4xf32> to vector<256x4xf32>
    %c8 = arith.constant 8 : index
    %c0_60 = arith.constant 0 : index
    %c0_61 = arith.constant 0 : index
    %60 = vector.load %arg3[%c8, %c0_60, %c0_61] : memref<9x4x8xf32, #tpu.memory_space<vmem>>, vector<1x4x8xf32>
    %61 = vector.shape_cast %60 : vector<1x4x8xf32> to vector<4x8xf32>
    %cst_62 = arith.constant dense<0.000000e+00> : vector<256x8xf32>
    %62 = tpu.matmul %59, %61, %cst_62 {dimension_numbers = #tpu.dot_dimension_numbers<[1], [0], [0], [1], [0, 0, 1, 1], [], []>} : vector<256x4xf32>, vector<4x8xf32>, vector<256x8xf32> -> vector<256x8xf32>
    %63 = arith.addf %56, %62 : vector<256x8xf32>
    %c0_63 = arith.constant 0 : index
    %c0_64 = arith.constant 0 : index
    %64 = vector.load %arg4[%c0_63, %c0_64] : memref<1x8xf32, #tpu.memory_space<vmem>>, vector<1x8xf32>
    %65 = vector.broadcast %64 : vector<1x8xf32> to vector<256x8xf32>
    %66 = arith.mulf %63, %65 : vector<256x8xf32>
    %c0_65 = arith.constant 0 : index
    %c0_66 = arith.constant 0 : index
    %67 = vector.load %arg5[%c0_65, %c0_66] : memref<1x8xf32, #tpu.memory_space<vmem>>, vector<1x8xf32>
    %68 = vector.broadcast %67 : vector<1x8xf32> to vector<256x8xf32>
    %69 = arith.addf %66, %68 : vector<256x8xf32>
    %cst_67 = arith.constant 0.000000e+00 : f32
    %70 = vector.broadcast %cst_67 : f32 to vector<256x8xf32>
    %71 = arith.maximumf %69, %70 : vector<256x8xf32>
    %72 = vector.shape_cast %71 : vector<256x8xf32> to vector<1x256x8xf32>
    %c0_68 = arith.constant 0 : index
    %c0_69 = arith.constant 0 : index
    %c0_70 = arith.constant 0 : index
    %73 = vector.load %arg6[%c0_68, %c0_69, %c0_70] : memref<1x256x8xf32, #tpu.memory_space<vmem>>, vector<1x256x8xf32>
    tpu.vector_store %arg6[%c0_68, %c0_69, %c0_70], %72 {strides = array<i32>} : memref<1x256x8xf32, #tpu.memory_space<vmem>>, vector<1x256x8xf32>,
    return
  }
  func.func @transform_0(%arg0: i32, %arg1: i32) -> (i32, i32, i32, i32) {
    %c0_i32 = arith.constant 0 : i32
    %c0_i32_0 = arith.constant 0 : i32
    %c0_i32_1 = arith.constant 0 : i32
    %c0_i32_2 = arith.constant 0 : i32
    return %arg0, %c0_i32, %c0_i32_0, %c0_i32_1 : i32, i32, i32, i32
  }
  func.func @transform_1(%arg0: i32, %arg1: i32) -> (i32, i32, i32) {
    %c0_i32 = arith.constant 0 : i32
    %c0_i32_0 = arith.constant 0 : i32
    %c0_i32_1 = arith.constant 0 : i32
    return %c0_i32, %c0_i32_0, %arg1 : i32, i32, i32
  }
  func.func @transform_2(%arg0: i32, %arg1: i32) -> (i32, i32) {
    %c0_i32 = arith.constant 0 : i32
    %c0_i32_0 = arith.constant 0 : i32
    return %c0_i32, %arg1 : i32, i32
  }
  func.func @transform_3(%arg0: i32, %arg1: i32) -> (i32, i32) {
    %c0_i32 = arith.constant 0 : i32
    %c0_i32_0 = arith.constant 0 : i32
    return %c0_i32, %arg1 : i32, i32
  }
  func.func @transform_4(%arg0: i32, %arg1: i32) -> (i32, i32, i32) {
    %c0_i32 = arith.constant 0 : i32
    %c0_i32_0 = arith.constant 0 : i32
    return %arg0, %c0_i32, %arg1 : i32, i32, i32
  }
}

</mosaic_0001>

<bundles_post_ra>
// kernel: tpu_custom_call.1
= control target key start
LH: loop header
LB: loop body
LE: loop exit
PB: predicated region body
PF: predicated region fallthrough
CT: control target
= control target key end

     0   :  { %s5308_s15 = smov 0   ;;  %s5310_s16 = smov 0   ;;  %s6896_s0 = inlined_call_operand.vmem [shape: f32[2,18,18,4], index: 0, kind: input, shape index: {}]   ;;  %s6897_s1 = inlined_call_operand.vmem [shape: f32[9,4,8], index: 1, kind: input, shape index: {}]   ;;  %s6898_s2 = inlined_call_operand.vmem [shape: f32[1,8], index: 2, kind: input, shape index: {}]   ;;  %s6899_s3 = inlined_call_operand.vmem [shape: f32[1,8], index: 3, kind: input, shape index: {}]   ;;  %s6900_s4 = inlined_call_operand.vmem [shape: f32[2,256,8], index: 4, kind: output, shape index: {}]  }
   0x1   :  { %s5312_s17 = smov 0  }
   0x2 LB: > { %s26_s18 = sadd.s32 1, %s5277_s16  ;;  %p3979_p0 = scmp.ge.s32.totalorder %s5281_s17, 1  ;;  %s5281_s17 = sphi %s5312_s17, %s14_s17   ;;  %s5277_s16 = sphi %s5310_s16, %s7128_s16   ;;  %s5273_s15 = sphi %s5308_s15, %s7127_s15  }
   0x3   : > { %p28_p1 = scmp.ge.s32.totalorder %s26_s18, 2  ;;  %p201_p2 = scmp.lt.s32.totalorder %s5281_s17, 3 }
   0x5   : > { %s7130_s18 = smov (%p28_p1, %s26_s18), 0  ;;  %p202_p3 = pnand %p3979_p0, %p201_p2 }
   0x7   : > { %205 = sbr.rel (%p202_p3) target bundleno = 511 (0x1ff), region = 36 }
   0xc   : > { %v3983_v0 = vld [vmem:[%s6897_s1 + $0x4] sm:$0xf]  ;;  %vm427_vm0 = vcmask 1043456   ;;  %p240_p4 = scmp.lt.s32.totalorder %s5273_s15, 1  ;;  %v295_v1 = vld [vmem:[%s6897_s1] sm:$0xf] }
   0xd   : > { %5232 = vmatprep.subr.msk.mxu1 %vm427_vm0, %v3983_v0  ;;  %4782 = vmatprep.subr.msk.mxu0 %vm427_vm0, %v3983_v0  ;;  %v4050_v2 = vld [vmem:[%s6897_s1 + $0x8] sm:$0xf]  ;;  %vm330_vm1 = vcmask 31744   ;;  %v5372_v9 = vld [vmem:[%s6897_s1 + $0xc] sm:$0xf]  ;;  %vm3822_vm2 = vcmask 64512  }
   0xe   : > { %5233 = vmatpush3.msk.msra.mxu1 %vm427_vm0, %v3983_v0  ;;  %4783 = vmatpush3.msk.msra.mxu0 %vm427_vm0, %v3983_v0  ;;  %s7132_s15 = smov (!%p240_p4, %s5273_s15), 1  ;;  %v5377_v10 = vld [vmem:[%s6897_s1 + $0x10] sm:$0xf]  ;;  %v5536_v43 = vld [vmem:[%s6897_s1 + $0x14] sm:$0xf] }
   0xf   : > { %4832 = vmatprep.subr.msk.mxu1 %vm427_vm0, %v295_v1  ;;  %4882 = vmatprep.subr.msk.mxu0 %vm427_vm0, %v4050_v2  ;;  %s5234_s25 = smul.u32 432, %s7132_s15  ;;  %v5541_v44 = vld [vmem:[%s6897_s1 + $0x18] sm:$0xf]  ;;  %s4484_s23 = sshll.u32 %s7132_s15, 8 }
  0x11   : > { %s5347_s28 = scalar_lea.vmem %s6896_s0, %s5234_s25  ;;  %s6686_s25 = scalar_lea.vmem %s6900_s4, %s4484_s23 }
  0x12   : > { %v296_v3 = vld [vmem:[%s5347_s28 + $0x1] sm:$0xff]  ;;  %v297_v5 = vld [vmem:[%s5347_s28 + $0x9] sm:$0xff]  ;;  %v5361_v7 = vld [vmem:[%s5347_s28 + $0x19] sm:$0xff] }
  0x13   : > { %v5351_v4 = vld [vmem:[%s5347_s28 + $0xc1] sm:$0xff]  ;;  %4784 = vmatprep.mubr.msk.f32.mxu0 %vm330_vm1, %v296_v3  ;;  %v5358_v6 = vld [vmem:[%s5347_s28 + $0xc9] sm:$0xff]  ;;  %v5364_v8 = vld [vmem:[%s5347_s28 + $0xd9] sm:$0xff] }
  0x14   : > { %4808 = vmatprep.mubr.msk.f32.mxu1 %vm330_vm1, %v5351_v4  ;;  %4785 = vmatmul.mubr.msk.f32.vlgmr.msra.gmra.mxu0 %vm330_vm1, %v297_v5  ;;  %v5382_v11 = vld [vmem:[%s5347_s28 + $0x21] sm:$0xff]  ;;  %v5392_v13 = vld [vmem:[%s5347_s28 + $0x31] sm:$0xff]  ;;  %v5410_v15 = vld [vmem:[%s5347_s28 + $0x39] sm:$0xff] }
  0x15   : > { %4809 = vmatmul.mubr.msk.f32.vlgmr.msra.gmra.mxu1 %vm330_vm1, %v5358_v6  ;;  %4883 = vmatpush3.msk.msra.mxu0 %vm427_vm0, %v4050_v2  ;;  %v5385_v12 = vld [vmem:[%s5347_s28 + $0xe1] sm:$0xff]  ;;  %v5395_v14 = vld [vmem:[%s5347_s28 + $0xf1] sm:$0xff]  ;;  %v5413_v16 = vld [vmem:[%s5347_s28 + $0xf9] sm:$0xff] }
  0x16   : > { %4833 = vmatpush3.msk.msra.mxu1 %vm427_vm0, %v295_v1  ;;  %4787 = vmatprep.mubr.msk.f32.mxu0 %vm330_vm1, %v5361_v7  ;;  %v5416_v17 = vld [vmem:[%s5347_s28 + $0x49] sm:$0xff]  ;;  %v5430_v19 = vld [vmem:[%s5347_s28 + $0x51] sm:$0xff]  ;;  %v5436_v21 = vld [vmem:[%s5347_s28 + $0x61] sm:$0xff] }
  0x17   : > { %4811 = vmatprep.mubr.msk.f32.mxu1 %vm330_vm1, %v5364_v8  ;;  %4932 = vmatprep.subr.msk.mxu1 %vm427_vm0, %v5372_v9  ;;  %v5419_v18 = vld [vmem:[%s5347_s28 + $0x109] sm:$0xff]  ;;  %v5433_v20 = vld [vmem:[%s5347_s28 + $0x111] sm:$0xff]  ;;  %v5439_v22 = vld [vmem:[%s5347_s28 + $0x121] sm:$0xff] }
  0x18   : > { %4982 = vmatprep.subr.msk.mxu0 %vm427_vm0, %v5377_v10  ;;  %4788 = vmatmul.mubr.msk.f32.gmra.mxu0 %vm330_vm1, %v5382_v11  ;;  %v5450_v23 = vld [vmem:[%s5347_s28 + $0x69] sm:$0xff]  ;;  %v5456_v25 = vld [vmem:[%s5347_s28 + $0x79] sm:$0xff]  ;;  %v5470_v27 = vld [vmem:[%s5347_s28 + $0x81] sm:$0xff] }
  0x19   : > { %4812 = vmatmul.mubr.msk.f32.gmra.mxu1 %vm330_vm1, %v5385_v12  ;;  %4790 = vmatprep.mubr.msk.f32.mxu0 %vm330_vm1, %v5392_v13  ;;  %v5453_v24 = vld [vmem:[%s5347_s28 + $0x129] sm:$0xff]  ;;  %v5459_v26 = vld [vmem:[%s5347_s28 + $0x139] sm:$0xff]  ;;  %v5473_v28 = vld [vmem:[%s5347_s28 + $0x141] sm:$0xff] }
  0x1a   : > { %4814 = vmatprep.mubr.msk.f32.mxu1 %vm330_vm1, %v5395_v14  ;;  %v5476_v29 = vld [vmem:[%s5347_s28 + $0x91] sm:$0xff]  ;;  %v5490_v31 = vld [vmem:[%s5347_s28 + $0x99] sm:$0xff]  ;;  %v5496_v33 = vld [vmem:[%s5347_s28 + $0xa9] sm:$0xff] }
  0x1b   : > { %v5479_v30 = vld [vmem:[%s5347_s28 + $0x151] sm:$0xff]  ;;  %v5493_v32 = vld [vmem:[%s5347_s28 + $0x159] sm:$0xff]  ;;  %v5499_v34 = vld [vmem:[%s5347_s28 + $0x169] sm:$0xff] }
  0x1c   : > { %4791 = vmatmul.mubr.msk.f32.gmra.mxu0 %vm330_vm1, %v5410_v15  ;;  %v5510_v35 = vld [vmem:[%s5347_s28 + $0xb1] sm:$0xff]  ;;  %v263_v37 = vld [vmem:[%s5347_s28] sm:$0xff]  ;;  %v264_v39 = vld [vmem:[%s5347_s28 + $0x8] sm:$0xff] }
  0x1d   : > { %4815 = vmatmul.mubr.msk.f32.gmra.mxu1 %vm330_vm1, %v5413_v16  ;;  %4793 = vmatprep.mubr.msk.f32.mxu0 %vm330_vm1, %v5416_v17  ;;  %v5513_v36 = vld [vmem:[%s5347_s28 + $0x171] sm:$0xff]  ;;  %v980_v38 = vld [vmem:[%s5347_s28 + $0x2] sm:$0xff]  ;;  %v5529_v42 = vld [vmem:[%s5347_s28 + $0x1a] sm:$0xff] }
  0x1e   : > { %4817 = vmatprep.mubr.msk.f32.mxu1 %vm330_vm1, %v5419_v18  ;;  %6961 = vst [vmem:[#allocation2_spill] sm:$0xff] %v5513_v36  ;;  %v981_v40 = vld [vmem:[%s5347_s28 + $0xa] sm:$0xff]  ;;  %v5526_v41 = vld [vmem:[%s5347_s28 + $0x18] sm:$0xff]  ;;  %6962 = vst [vmem:[#allocation3_spill] sm:$0xff] %v5529_v42 }
  0x1f   : > { %v5548_v45 = vld [vmem:[%s5347_s28 + $0x20] sm:$0xff]  ;;  %v5558_v47 = vld [vmem:[%s5347_s28 + $0x30] sm:$0xff]  ;;  %v5576_v49 = vld [vmem:[%s5347_s28 + $0x38] sm:$0xff] }
  0x20   : > { %4794 = vmatmul.mubr.msk.f32.gmra.mxu0 %vm330_vm1, %v5430_v19  ;;  %v5551_v46 = vld [vmem:[%s5347_s28 + $0x22] sm:$0xff]  ;;  %v5561_v48 = vld [vmem:[%s5347_s28 + $0x32] sm:$0xff]  ;;  %v5579_v50 = vld [vmem:[%s5347_s28 + $0x3a] sm:$0xff] }
  0x21   : > { %4818 = vmatmul.mubr.msk.f32.gmra.mxu1 %vm330_vm1, %v5433_v20  ;;  %4796 = vmatprep.mubr.msk.f32.mxu0 %vm330_vm1, %v5436_v21  ;;  %6963 = vst [vmem:[#allocation4_spill] sm:$0xff] %v5551_v46  ;;  %6964 = vst [vmem:[#allocation5_spill] sm:$0xff] %v5561_v48  ;;  %v5582_v51 = vld [vmem:[%s5347_s28 + $0x48] sm:$0xff]  ;;  %v5596_v53 = vld [vmem:[%s5347_s28 + $0x50] sm:$0xff] }
  0x22   : > { %4820 = vmatprep.mubr.msk.f32.mxu1 %vm330_vm1, %v5439_v22  ;;  %6965 = vst [vmem:[#allocation6_spill] sm:$0xff] %v5579_v50  ;;  %v5585_v52 = vld [vmem:[%s5347_s28 + $0x4a] sm:$0xff]  ;;  %v5599_v54 = vld [vmem:[%s5347_s28 + $0x52] sm:$0xff]  ;;  %v5602_v55 = vld [vmem:[%s5347_s28 + $0x60] sm:$0xff] }
  0x23   : > { %6966 = vst [vmem:[#allocation7_spill] sm:$0xff] %v5585_v52  ;;  %6967 = vst [vmem:[#allocation8_spill] sm:$0xff] %v5599_v54  ;;  %v5605_v56 = vld [vmem:[%s5347_s28 + $0x62] sm:$0xff]  ;;  %v5619_v58 = vld [vmem:[%s5347_s28 + $0x6a] sm:$0xff] }
  0x24   : > { %4797 = vmatmul.mubr.msk.f32.gmra.mxu0 %vm330_vm1, %v5450_v23  ;;  %6968 = vst [vmem:[#allocation9_spill] sm:$0xff] %v5605_v56  ;;  %v5616_v57 = vld [vmem:[%s5347_s28 + $0x68] sm:$0xff]  ;;  %6969 = vst [vmem:[#allocation10_spill] sm:$0xff] %v5619_v58  ;;  %v5622_v59 = vld [vmem:[%s5347_s28 + $0x78] sm:$0xff] }
  0x25   : > { %4821 = vmatmul.mubr.msk.f32.gmra.mxu1 %vm330_vm1, %v5453_v24  ;;  %4799 = vmatprep.mubr.msk.f32.mxu0 %vm330_vm1, %v5456_v25  ;;  %v5625_v60 = vld [vmem:[%s5347_s28 + $0x7a] sm:$0xff]  ;;  %v5639_v62 = vld [vmem:[%s5347_s28 + $0x82] sm:$0xff]  ;;  %v5642_v63 = vld [vmem:[%s5347_s28 + $0x90] sm:$0xff] }
  0x26   : > { %4823 = vmatprep.mubr.msk.f32.mxu1 %vm330_vm1, %v5459_v26  ;;  %6970 = vst [vmem:[#allocation11_spill] sm:$0xff] %v5625_v60  ;;  %v5636_v61 = vld [vmem:[%s5347_s28 + $0x80] sm:$0xff]  ;;  %6971 = vst [vmem:[#allocation12_spill] sm:$0xff] %v5639_v62  ;;  %v5645_v0 = vld [vmem:[%s5347_s28 + $0x92] sm:$0xff] }
  0x27   : > { %6972 = vst [vmem:[#allocation13_spill] sm:$0xff] %v5645_v0  ;;  %v5656_v1 = vld [vmem:[%s5347_s28 + $0x98] sm:$0xff]  ;;  %v5662_v3 = vld [vmem:[%s5347_s28 + $0xa8] sm:$0xff] }
  0x28   : > { %4800 = vmatmul.mubr.msk.f32.gmra.mxu0 %vm330_vm1, %v5470_v27  ;;  %v5659_v2 = vld [vmem:[%s5347_s28 + $0x9a] sm:$0xff]  ;;  %v5665_v5 = vld [vmem:[%s5347_s28 + $0xaa] sm:$0xff] }
  0x29   : > { %4824 = vmatmul.mubr.msk.f32.gmra.mxu1 %vm330_vm1, %v5473_v28  ;;  %4802 = vmatprep.mubr.msk.f32.mxu0 %vm330_vm1, %v5476_v29  ;;  %6973 = vst [vmem:[#allocation14_spill] sm:$0xff] %v5659_v2  ;;  %6974 = vst [vmem:[#allocation15_spill] sm:$0xff] %v5665_v5 }
  0x2a   : > { %4826 = vmatprep.mubr.msk.f32.mxu1 %vm330_vm1, %v5479_v30 }
  0x2c   : > { %4803 = vmatmul.mubr.msk.f32.gmra.mxu0 %vm330_vm1, %v5490_v31 }
  0x2d   : > { %4827 = vmatmul.mubr.msk.f32.gmra.mxu1 %vm330_vm1, %v5493_v32  ;;  %4805 = vmatprep.mubr.msk.f32.mxu0 %vm330_vm1, %v5496_v33 }
  0x2e   : > { %4829 = vmatprep.mubr.msk.f32.mxu1 %vm330_vm1, %v5499_v34 }
  0x30   : > { %4806 = vmatmul.mubr.msk.f32.gmra.mxu0 %vm330_vm1, %v5510_v35 }
  0x31   : > { %4830 = vmatmul.mubr.msk.f32.gmra.mxu1 %vm330_vm1, %v5513_v36  ;;  %4884 = vmatprep.mubr.msk.f32.mxu0 %vm330_vm1, %v980_v38  ;;  %v5685_v38 = vld [vmem:[%s5347_s28 + $0xc2] sm:$0xff]  ;;  %v5825_v36 = vld [vmem:[%s5347_s28 + $0x16a] sm:$0xff] }
  0x32   : > { %4834 = vmatprep.mubr.msk.f32.mxu1 %vm330_vm1, %v263_v37  ;;  %v5682_v37 = vld [vmem:[%s5347_s28 + $0xc0] sm:$0xff]  ;;  %6976 = vst [vmem:[#allocation17_spill] sm:$0xff] %v5685_v38  ;;  %6990 = vst [vmem:[#allocation31_spill] sm:$0xff] %v5825_v36 }
  0x34   : > { %4885 = vmatmul.mubr.msk.f32.vlgmr.msra.gmra.mxu0 %vm330_vm1, %v981_v40  ;;  %v5699_v40 = vld [vmem:[%s5347_s28 + $0xca] sm:$0xff] }
  0x35   : > { %4835 = vmatmul.mubr.msk.f32.vlgmr.msra.gmra.mxu1 %vm330_vm1, %v264_v39  ;;  %4983 = vmatpush3.msk.msra.mxu0 %vm427_vm0, %v5377_v10  ;;  %v5679_v10 = vld [vmem:[%s5347_s28 + $0xb2] sm:$0xff]  ;;  %v5696_v39 = vld [vmem:[%s5347_s28 + $0xc8] sm:$0xff]  ;;  %6977 = vst [vmem:[#allocation18_spill] sm:$0xff] %v5699_v40 }
  0x36   : > { %4933 = vmatpush3.msk.msra.mxu1 %vm427_vm0, %v5372_v9  ;;  %4837 = vmatprep.mubr.msk.f32.mxu1 %vm330_vm1, %v5526_v41  ;;  %v5676_v9 = vld [vmem:[%s5347_s28 + $0xb0] sm:$0xff]  ;;  %6975 = vst [vmem:[#allocation16_spill] sm:$0xff] %v5679_v10 }
  0x37   : > { %4887 = vmatprep.mubr.msk.f32.mxu0 %vm330_vm1, %v5529_v42  ;;  %5032 = vmatprep.subr.msk.mxu1 %vm427_vm0, %v5536_v43  ;;  %v5822_v42 = vld [vmem:[%s5347_s28 + $0x168] sm:$0xff] }
  0x38   : > { %5082 = vmatprep.subr.msk.mxu0 %vm427_vm0, %v5541_v44  ;;  %4888 = vmatmul.mubr.msk.f32.gmra.mxu0 %vm330_vm1, %v5551_v46  ;;  %v5805_v46 = vld [vmem:[%s5347_s28 + $0x152] sm:$0xff] }
  0x39   : > { %4838 = vmatmul.mubr.msk.f32.gmra.mxu1 %vm330_vm1, %v5548_v45  ;;  %4890 = vmatprep.mubr.msk.f32.mxu0 %vm330_vm1, %v5561_v48  ;;  %v5802_v48 = vld [vmem:[%s5347_s28 + $0x150] sm:$0xff]  ;;  %6988 = vst [vmem:[#allocation29_spill] sm:$0xff] %v5805_v46 }
  0x3a   : > { %4840 = vmatprep.mubr.msk.f32.mxu1 %vm330_vm1, %v5558_v47 }
  0x3c   : > { %4891 = vmatmul.mubr.msk.f32.gmra.mxu0 %vm330_vm1, %v5579_v50  ;;  %v5785_v50 = vld [vmem:[%s5347_s28 + $0x13a] sm:$0xff] }
  0x3d   : > { %4841 = vmatmul.mubr.msk.f32.gmra.mxu1 %vm330_vm1, %v5576_v49  ;;  %4893 = vmatprep.mubr.msk.f32.mxu0 %vm330_vm1, %v5585_v52  ;;  %v5782_v52 = vld [vmem:[%s5347_s28 + $0x138] sm:$0xff]  ;;  %6986 = vst [vmem:[#allocation27_spill] sm:$0xff] %v5785_v50 }
  0x3e   : > { %4843 = vmatprep.mubr.msk.f32.mxu1 %vm330_vm1, %v5582_v51 }
  0x40   : > { %4894 = vmatmul.mubr.msk.f32.gmra.mxu0 %vm330_vm1, %v5599_v54  ;;  %v5765_v54 = vld [vmem:[%s5347_s28 + $0x122] sm:$0xff] }
  0x41   : > { %4844 = vmatmul.mubr.msk.f32.gmra.mxu1 %vm330_vm1, %v5596_v53  ;;  %4896 = vmatprep.mubr.msk.f32.mxu0 %vm330_vm1, %v5605_v56  ;;  %v5762_v56 = vld [vmem:[%s5347_s28 + $0x120] sm:$0xff]  ;;  %6984 = vst [vmem:[#allocation25_spill] sm:$0xff] %v5765_v54 }
  0x42   : > { %4846 = vmatprep.mubr.msk.f32.mxu1 %vm330_vm1, %v5602_v55 }
  0x44   : > { %4897 = vmatmul.mubr.msk.f32.gmra.mxu0 %vm330_vm1, %v5619_v58  ;;  %v5745_v58 = vld [vmem:[%s5347_s28 + $0x10a] sm:$0xff] }
  0x45   : > { %4847 = vmatmul.mubr.msk.f32.gmra.mxu1 %vm330_vm1, %v5616_v57  ;;  %4899 = vmatprep.mubr.msk.f32.mxu0 %vm330_vm1, %v5625_v60  ;;  %v5742_v60 = vld [vmem:[%s5347_s28 + $0x108] sm:$0xff]  ;;  %6982 = vst [vmem:[#allocation23_spill] sm:$0xff] %v5745_v58 }
  0x46   : > { %4849 = vmatprep.mubr.msk.f32.mxu1 %vm330_vm1, %v5622_v59 }
  0x48   : > { %4900 = vmatmul.mubr.msk.f32.gmra.mxu0 %vm330_vm1, %v5639_v62  ;;  %v5725_v62 = vld [vmem:[%s5347_s28 + $0xf2] sm:$0xff] }
  0x49   : > { %4850 = vmatmul.mubr.msk.f32.gmra.mxu1 %vm330_vm1, %v5636_v61  ;;  %4902 = vmatprep.mubr.msk.f32.mxu0 %vm330_vm1, %v5645_v0  ;;  %v5722_v0 = vld [vmem:[%s5347_s28 + $0xf0] sm:$0xff]  ;;  %6980 = vst [vmem:[#allocation21_spill] sm:$0xff] %v5725_v62 }
  0x4a   : > { %4852 = vmatprep.mubr.msk.f32.mxu1 %vm330_vm1, %v5642_v63 }
  0x4c   : > { %4903 = vmatmul.mubr.msk.f32.gmra.mxu0 %vm330_vm1, %v5659_v2  ;;  %v5705_v2 = vld [vmem:[%s5347_s28 + $0xda] sm:$0xff] }
  0x4d   : > { %4853 = vmatmul.mubr.msk.f32.gmra.mxu1 %vm330_vm1, %v5656_v1  ;;  %4905 = vmatprep.mubr.msk.f32.mxu0 %vm330_vm1, %v5665_v5  ;;  %v5702_v5 = vld [vmem:[%s5347_s28 + $0xd8] sm:$0xff]  ;;  %6978 = vst [vmem:[#allocation19_spill] sm:$0xff] %v5705_v2 }
  0x4e   : > { %4855 = vmatprep.mubr.msk.f32.mxu1 %vm330_vm1, %v5662_v3 }
  0x50   : > { %4906 = vmatmul.mubr.msk.f32.gmra.mxu0 %vm330_vm1, %v5679_v10  ;;  %v5719_v10 = vld [vmem:[%s5347_s28 + $0xe2] sm:$0xff] }
  0x51   : > { %4856 = vmatmul.mubr.msk.f32.gmra.mxu1 %vm330_vm1, %v5676_v9  ;;  %4908 = vmatprep.mubr.msk.f32.mxu0 %vm330_vm1, %v5685_v38  ;;  %v5716_v38 = vld [vmem:[%s5347_s28 + $0xe0] sm:$0xff]  ;;  %6979 = vst [vmem:[#allocation20_spill] sm:$0xff] %v5719_v10 }
  0x52   : > { %4858 = vmatprep.mubr.msk.f32.mxu1 %vm330_vm1, %v5682_v37 }
  0x54   : > { %4909 = vmatmul.mubr.msk.f32.gmra.mxu0 %vm330_vm1, %v5699_v40  ;;  %v5739_v40 = vld [vmem:[%s5347_s28 + $0xfa] sm:$0xff] }
  0x55   : > { %4859 = vmatmul.mubr.msk.f32.gmra.mxu1 %vm330_vm1, %v5696_v39  ;;  %4911 = vmatprep.mubr.msk.f32.mxu0 %vm330_vm1, %v5705_v2  ;;  %v5736_v2 = vld [vmem:[%s5347_s28 + $0xf8] sm:$0xff]  ;;  %6981 = vst [vmem:[#allocation22_spill] sm:$0xff] %v5739_v40 }
  0x56   : > { %4861 = vmatprep.mubr.msk.f32.mxu1 %vm330_vm1, %v5702_v5 }
  0x58   : > { %4912 = vmatmul.mubr.msk.f32.gmra.mxu0 %vm330_vm1, %v5719_v10  ;;  %v5759_v10 = vld [vmem:[%s5347_s28 + $0x112] sm:$0xff] }
  0x59   : > { %4862 = vmatmul.mubr.msk.f32.gmra.mxu1 %vm330_vm1, %v5716_v38  ;;  %4914 = vmatprep.mubr.msk.f32.mxu0 %vm330_vm1, %v5725_v62  ;;  %v5756_v62 = vld [vmem:[%s5347_s28 + $0x110] sm:$0xff]  ;;  %6983 = vst [vmem:[#allocation24_spill] sm:$0xff] %v5759_v10 }
  0x5a   : > { %4864 = vmatprep.mubr.msk.f32.mxu1 %vm330_vm1, %v5722_v0 }
  0x5c   : > { %4915 = vmatmul.mubr.msk.f32.gmra.mxu0 %vm330_vm1, %v5739_v40  ;;  %v5779_v40 = vld [vmem:[%s5347_s28 + $0x12a] sm:$0xff] }
  0x5d   : > { %4865 = vmatmul.mubr.msk.f32.gmra.mxu1 %vm330_vm1, %v5736_v2  ;;  %4917 = vmatprep.mubr.msk.f32.mxu0 %vm330_vm1, %v5745_v58  ;;  %v5776_v58 = vld [vmem:[%s5347_s28 + $0x128] sm:$0xff]  ;;  %6985 = vst [vmem:[#allocation26_spill] sm:$0xff] %v5779_v40 }
  0x5e   : > { %4867 = vmatprep.mubr.msk.f32.mxu1 %vm330_vm1, %v5742_v60 }
  0x60   : > { %4918 = vmatmul.mubr.msk.f32.gmra.mxu0 %vm330_vm1, %v5759_v10  ;;  %v5799_v10 = vld [vmem:[%s5347_s28 + $0x142] sm:$0xff] }
  0x61   : > { %4868 = vmatmul.mubr.msk.f32.gmra.mxu1 %vm330_vm1, %v5756_v62  ;;  %4920 = vmatprep.mubr.msk.f32.mxu0 %vm330_vm1, %v5765_v54  ;;  %v5796_v54 = vld [vmem:[%s5347_s28 + $0x140] sm:$0xff]  ;;  %6987 = vst [vmem:[#allocation28_spill] sm:$0xff] %v5799_v10 }
  0x62   : > { %4870 = vmatprep.mubr.msk.f32.mxu1 %vm330_vm1, %v5762_v56 }
  0x64   : > { %4921 = vmatmul.mubr.msk.f32.gmra.mxu0 %vm330_vm1, %v5779_v40  ;;  %v5819_v40 = vld [vmem:[%s5347_s28 + $0x15a] sm:$0xff] }
  0x65   : > { %4871 = vmatmul.mubr.msk.f32.gmra.mxu1 %vm330_vm1, %v5776_v58  ;;  %4923 = vmatprep.mubr.msk.f32.mxu0 %vm330_vm1, %v5785_v50  ;;  %v5816_v50 = vld [vmem:[%s5347_s28 + $0x158] sm:$0xff]  ;;  %6989 = vst [vmem:[#allocation30_spill] sm:$0xff] %v5819_v40 }
  0x66   : > { %4873 = vmatprep.mubr.msk.f32.mxu1 %vm330_vm1, %v5782_v52 }
  0x68   : > { %4924 = vmatmul.mubr.msk.f32.gmra.mxu0 %vm330_vm1, %v5799_v10  ;;  %v5839_v10 = vld [vmem:[%s5347_s28 + $0x172] sm:$0xff] }
  0x69   : > { %4874 = vmatmul.mubr.msk.f32.gmra.mxu1 %vm330_vm1, %v5796_v54  ;;  %4926 = vmatprep.mubr.msk.f32.mxu0 %vm330_vm1, %v5805_v46  ;;  %v5836_v46 = vld [vmem:[%s5347_s28 + $0x170] sm:$0xff]  ;;  %6991 = vst [vmem:[#allocation32_spill] sm:$0xff] %v5839_v10 }
  0x6a   : > { %4876 = vmatprep.mubr.msk.f32.mxu1 %vm330_vm1, %v5802_v48 }
  0x6c   : > { %4927 = vmatmul.mubr.msk.f32.gmra.mxu0 %vm330_vm1, %v5819_v40 }
  0x6d   : > { %4877 = vmatmul.mubr.msk.f32.gmra.mxu1 %vm330_vm1, %v5816_v50  ;;  %4929 = vmatprep.mubr.msk.f32.mxu0 %vm330_vm1, %v5825_v36  ;;  %v5856_v36 = vld [vmem:[%s6897_s1 + $0x1c] sm:$0xf] }
  0x6e   : > { %4879 = vmatprep.mubr.msk.f32.mxu1 %vm330_vm1, %v5822_v42 }
  0x70   : > { %4930 = vmatmul.mubr.msk.f32.gmra.mxu0 %vm330_vm1, %v5839_v10  ;;  %v5861_v10 = vld [vmem:[%s6897_s1 + $0x20] sm:$0xf] }
  0x71   : > { %4880 = vmatmul.mubr.msk.f32.gmra.mxu1 %vm330_vm1, %v5836_v46  ;;  %4984 = vmatprep.mubr.msk.f32.mxu0 %vm330_vm1, %v5361_v7  ;;  %v6993_v7 = vld [vmem:[#allocation2_spill] sm:$0xff] }
  0x72   : > { %4934 = vmatprep.mubr.msk.f32.mxu1 %vm330_vm1, %v5526_v41 }
  0x74   : > { %4985 = vmatmul.mubr.msk.f32.vlgmr.msra.gmra.mxu0 %vm330_vm1, %v5382_v11  ;;  %v5997_v11 = vld [vmem:[%s5347_s28 + $0x189] sm:$0xff] }
  0x75   : > { %4935 = vmatmul.mubr.msk.f32.vlgmr.msra.gmra.mxu1 %vm330_vm1, %v5548_v45  ;;  %5083 = vmatpush3.msk.msra.mxu0 %vm427_vm0, %v5541_v44  ;;  %6994 = vst [vmem:[#allocation2_spill] sm:$0xff] %v5997_v11  ;;  %v7012_v44 = vld [vmem:[#allocation20_spill] sm:$0xff]  ;;  %v7013_v45 = vld [vmem:[#allocation21_spill] sm:$0xff] }
  0x76   : > { %5033 = vmatpush3.msk.msra.mxu1 %vm427_vm0, %v5536_v43  ;;  %4937 = vmatprep.mubr.msk.f32.mxu1 %vm330_vm1, %v5558_v47 }
  0x77   : > { %4987 = vmatprep.mubr.msk.f32.mxu0 %vm330_vm1, %v5392_v13  ;;  %5132 = vmatprep.subr.msk.mxu1 %vm427_vm0, %v5856_v36 }
  0x78   : > { %5182 = vmatprep.subr.msk.mxu0 %vm427_vm0, %v5861_v10  ;;  %4988 = vmatmul.mubr.msk.f32.gmra.mxu0 %vm330_vm1, %v5410_v15 }
  0x79   : > { %4938 = vmatmul.mubr.msk.f32.gmra.mxu1 %vm330_vm1, %v5576_v49  ;;  %4990 = vmatprep.mubr.msk.f32.mxu0 %vm330_vm1, %v5416_v17 }
  0x7a   : > { %4940 = vmatprep.mubr.msk.f32.mxu1 %vm330_vm1, %v5582_v51 }
  0x7c   : > { %4991 = vmatmul.mubr.msk.f32.gmra.mxu0 %vm330_vm1, %v5430_v19 }
  0x7d   : > { %4941 = vmatmul.mubr.msk.f32.gmra.mxu1 %vm330_vm1, %v5596_v53  ;;  %4993 = vmatprep.mubr.msk.f32.mxu0 %vm330_vm1, %v5436_v21 }
  0x7e   : > { %4943 = vmatprep.mubr.msk.f32.mxu1 %vm330_vm1, %v5602_v55 }
  0x80   : > { %4994 = vmatmul.mubr.msk.f32.gmra.mxu0 %vm330_vm1, %v5450_v23 }
  0x81   : > { %4944 = vmatmul.mubr.msk.f32.gmra.mxu1 %vm330_vm1, %v5616_v57  ;;  %4996 = vmatprep.mubr.msk.f32.mxu0 %vm330_vm1, %v5456_v25 }
  0x82   : > { %4946 = vmatprep.mubr.msk.f32.mxu1 %vm330_vm1, %v5622_v59 }
  0x84   : > { %4997 = vmatmul.mubr.msk.f32.gmra.mxu0 %vm330_vm1, %v5470_v27 }
  0x85   : > { %4947 = vmatmul.mubr.msk.f32.gmra.mxu1 %vm330_vm1, %v5636_v61  ;;  %4999 = vmatprep.mubr.msk.f32.mxu0 %vm330_vm1, %v5476_v29  ;;  %v7004_v29 = vld [vmem:[#allocation12_spill] sm:$0xff] }
  0x86   : > { %4949 = vmatprep.mubr.msk.f32.mxu1 %vm330_vm1, %v5642_v63 }
  0x88   : > { %5000 = vmatmul.mubr.msk.f32.gmra.mxu0 %vm330_vm1, %v5490_v31  ;;  %v7006_v31 = vld [vmem:[#allocation14_spill] sm:$0xff] }
  0x89   : > { %4950 = vmatmul.mubr.msk.f32.gmra.mxu1 %vm330_vm1, %v5656_v1  ;;  %5002 = vmatprep.mubr.msk.f32.mxu0 %vm330_vm1, %v5496_v33  ;;  %v7008_v33 = vld [vmem:[#allocation16_spill] sm:$0xff] }
  0x8a   : > { %4952 = vmatprep.mubr.msk.f32.mxu1 %vm330_vm1, %v5662_v3 }
  0x8c   : > { %5003 = vmatmul.mubr.msk.f32.gmra.mxu0 %vm330_vm1, %v5510_v35  ;;  %v7010_v35 = vld [vmem:[#allocation18_spill] sm:$0xff] }
  0x8d   : > { %4953 = vmatmul.mubr.msk.f32.gmra.mxu1 %vm330_vm1, %v5676_v9  ;;  %5005 = vmatprep.mubr.msk.f32.mxu0 %vm330_vm1, %v5351_v4  ;;  %v5980_v4 = vld [vmem:[%s5347_s28 + $0x180] sm:$0xff] }
  0x8e   : > { %4955 = vmatprep.mubr.msk.f32.mxu1 %vm330_vm1, %v5682_v37 }
  0x90   : > { %5006 = vmatmul.mubr.msk.f32.gmra.mxu0 %vm330_vm1, %v5358_v6  ;;  %v5983_v6 = vld [vmem:[%s5347_s28 + $0x181] sm:$0xff] }
  0x91   : > { %4956 = vmatmul.mubr.msk.f32.gmra.mxu1 %vm330_vm1, %v5696_v39  ;;  %5008 = vmatprep.mubr.msk.f32.mxu0 %vm330_vm1, %v5364_v8  ;;  %6992 = vst [vmem:[#allocation33_spill] sm:$0xff] %v5983_v6  ;;  %v5994_v8 = vld [vmem:[%s5347_s28 + $0x188] sm:$0xff] }
  0x92   : > { %4958 = vmatprep.mubr.msk.f32.mxu1 %vm330_vm1, %v5702_v5 }
  0x94   : > { %5009 = vmatmul.mubr.msk.f32.gmra.mxu0 %vm330_vm1, %v5385_v12  ;;  %v6995_v12 = vld [vmem:[#allocation3_spill] sm:$0xff] }
  0x95   : > { %4959 = vmatmul.mubr.msk.f32.gmra.mxu1 %vm330_vm1, %v5716_v38  ;;  %5011 = vmatprep.mubr.msk.f32.mxu0 %vm330_vm1, %v5395_v14  ;;  %v6996_v14 = vld [vmem:[#allocation4_spill] sm:$0xff] }
  0x96   : > { %4961 = vmatprep.mubr.msk.f32.mxu1 %vm330_vm1, %v5722_v0 }
  0x98   : > { %5012 = vmatmul.mubr.msk.f32.gmra.mxu0 %vm330_vm1, %v5413_v16  ;;  %v6997_v16 = vld [vmem:[#allocation5_spill] sm:$0xff] }
  0x99   : > { %4962 = vmatmul.mubr.msk.f32.gmra.mxu1 %vm330_vm1, %v5736_v2  ;;  %5014 = vmatprep.mubr.msk.f32.mxu0 %vm330_vm1, %v5419_v18  ;;  %v6998_v18 = vld [vmem:[#allocation6_spill] sm:$0xff] }
  0x9a   : > { %4964 = vmatprep.mubr.msk.f32.mxu1 %vm330_vm1, %v5742_v60 }
  0x9c   : > { %5015 = vmatmul.mubr.msk.f32.gmra.mxu0 %vm330_vm1, %v5433_v20  ;;  %v6999_v20 = vld [vmem:[#allocation7_spill] sm:$0xff] }
  0x9d   : > { %4965 = vmatmul.mubr.msk.f32.gmra.mxu1 %vm330_vm1, %v5756_v62  ;;  %5017 = vmatprep.mubr.msk.f32.mxu0 %vm330_vm1, %v5439_v22  ;;  %v7000_v22 = vld [vmem:[#allocation8_spill] sm:$0xff] }
  0x9e   : > { %4967 = vmatprep.mubr.msk.f32.mxu1 %vm330_vm1, %v5762_v56 }
  0xa0   : > { %5018 = vmatmul.mubr.msk.f32.gmra.mxu0 %vm330_vm1, %v5453_v24  ;;  %v7001_v24 = vld [vmem:[#allocation9_spill] sm:$0xff] }
  0xa1   : > { %4968 = vmatmul.mubr.msk.f32.gmra.mxu1 %vm330_vm1, %v5776_v58  ;;  %5020 = vmatprep.mubr.msk.f32.mxu0 %vm330_vm1, %v5459_v26  ;;  %v7002_v26 = vld [vmem:[#allocation10_spill] sm:$0xff] }
  0xa2   : > { %4970 = vmatprep.mubr.msk.f32.mxu1 %vm330_vm1, %v5782_v52 }
  0xa4   : > { %5021 = vmatmul.mubr.msk.f32.gmra.mxu0 %vm330_vm1, %v5473_v28  ;;  %v7003_v28 = vld [vmem:[#allocation11_spill] sm:$0xff] }
  0xa5   : > { %4971 = vmatmul.mubr.msk.f32.gmra.mxu1 %vm330_vm1, %v5796_v54  ;;  %5023 = vmatprep.mubr.msk.f32.mxu0 %vm330_vm1, %v5479_v30  ;;  %v7005_v30 = vld [vmem:[#allocation13_spill] sm:$0xff] }
  0xa6   : > { %4973 = vmatprep.mubr.msk.f32.mxu1 %vm330_vm1, %v5802_v48 }
  0xa8   : > { %5024 = vmatmul.mubr.msk.f32.gmra.mxu0 %vm330_vm1, %v5493_v32  ;;  %v7007_v32 = vld [vmem:[#allocation15_spill] sm:$0xff] }
  0xa9   : > { %4974 = vmatmul.mubr.msk.f32.gmra.mxu1 %vm330_vm1, %v5816_v50  ;;  %5026 = vmatprep.mubr.msk.f32.mxu0 %vm330_vm1, %v5499_v34  ;;  %v7009_v34 = vld [vmem:[#allocation17_spill] sm:$0xff] }
  0xaa   : > { %4976 = vmatprep.mubr.msk.f32.mxu1 %vm330_vm1, %v5822_v42 }
  0xac   : > { %5027 = vmatmul.mubr.msk.f32.gmra.mxu0 %vm330_vm1, %v6993_v7 }
  0xad   : > { %4977 = vmatmul.mubr.msk.f32.gmra.mxu1 %vm330_vm1, %v5836_v46  ;;  %5029 = vmatprep.mubr.msk.f32.mxu0 %vm330_vm1, %v5983_v6  ;;  %v4312_v6 = vld [vmem:[%s5347_s28 + $0x198] sm:$0xff] }
  0xae   : > { %4979 = vmatprep.mubr.msk.f32.mxu1 %vm330_vm1, %v5980_v4 }
  0xb0   : > { %5030 = vmatmul.mubr.msk.f32.gmra.mxu0 %vm330_vm1, %v5997_v11  ;;  %v6172_v11 = vld [vmem:[%s5347_s28 + $0x182] sm:$0xff] }
  0xb1   : > { %4980 = vmatmul.mubr.msk.f32.gmra.mxu1 %vm330_vm1, %v5994_v8  ;;  %5084 = vmatprep.mubr.msk.f32.mxu0 %vm330_vm1, %v5558_v47  ;;  %7027 = vst [vmem:[#allocation7_spill] sm:$0xff] %v6172_v11 }
  0xb2   : > { %5034 = vmatprep.mubr.msk.f32.mxu1 %vm330_vm1, %v6995_v12 }
  0xb4   : > { %5085 = vmatmul.mubr.msk.f32.vlgmr.msra.gmra.mxu0 %vm330_vm1, %v5576_v49 }
  0xb5   : > { %5035 = vmatmul.mubr.msk.f32.vlgmr.msra.gmra.mxu1 %vm330_vm1, %v6996_v14  ;;  %5183 = vmatpush3.msk.msra.mxu0 %vm427_vm0, %v5861_v10 }
  0xb6   : > { %5133 = vmatpush3.msk.msra.mxu1 %vm427_vm0, %v5856_v36  ;;  %5037 = vmatprep.mubr.msk.f32.mxu1 %vm330_vm1, %v6997_v16  ;;  %v7011_v36 = vld [vmem:[#allocation19_spill] sm:$0xff] }
  0xb7   : > { %5087 = vmatprep.mubr.msk.f32.mxu0 %vm330_vm1, %v5582_v51 }
  0xb8   : > { %5088 = vmatmul.mubr.msk.f32.gmra.mxu0 %vm330_vm1, %v5596_v53 }
  0xb9   : > { %5038 = vmatmul.mubr.msk.f32.gmra.mxu1 %vm330_vm1, %v6998_v18  ;;  %5090 = vmatprep.mubr.msk.f32.mxu0 %vm330_vm1, %v5602_v55  ;;  %v7014_v55 = vld [vmem:[#allocation22_spill] sm:$0xff] }
  0xba   : > { %5040 = vmatprep.mubr.msk.f32.mxu1 %vm330_vm1, %v6999_v20 }
  0xbc   : > { %5091 = vmatmul.mubr.msk.f32.gmra.mxu0 %vm330_vm1, %v5616_v57  ;;  %v7015_v57 = vld [vmem:[#allocation23_spill] sm:$0xff] }
  0xbd   : > { %5041 = vmatmul.mubr.msk.f32.gmra.mxu1 %vm330_vm1, %v7000_v22  ;;  %5093 = vmatprep.mubr.msk.f32.mxu0 %vm330_vm1, %v5622_v59 }
  0xbe   : > { %5043 = vmatprep.mubr.msk.f32.mxu1 %vm330_vm1, %v7001_v24 }
  0xc0   : > { %5094 = vmatmul.mubr.msk.f32.gmra.mxu0 %vm330_vm1, %v5636_v61 }
  0xc1   : > { %5044 = vmatmul.mubr.msk.f32.gmra.mxu1 %vm330_vm1, %v7002_v26  ;;  %5096 = vmatprep.mubr.msk.f32.mxu0 %vm330_vm1, %v5642_v63 }
  0xc2   : > { %5046 = vmatprep.mubr.msk.f32.mxu1 %vm330_vm1, %v7003_v28 }
  0xc4   : > { %5097 = vmatmul.mubr.msk.f32.gmra.mxu0 %vm330_vm1, %v5656_v1 }
  0xc5   : > { %5047 = vmatmul.mubr.msk.f32.gmra.mxu1 %vm330_vm1, %v7004_v29  ;;  %5099 = vmatprep.mubr.msk.f32.mxu0 %vm330_vm1, %v5662_v3 }
  0xc6   : > { %5049 = vmatprep.mubr.msk.f32.mxu1 %vm330_vm1, %v7005_v30 }
  0xc8   : > { %5100 = vmatmul.mubr.msk.f32.gmra.mxu0 %vm330_vm1, %v5676_v9 }
  0xc9   : > { %5050 = vmatmul.mubr.msk.f32.gmra.mxu1 %vm330_vm1, %v7006_v31  ;;  %5102 = vmatprep.mubr.msk.f32.mxu0 %vm330_vm1, %v5682_v37 }
  0xca   : > { %5052 = vmatprep.mubr.msk.f32.mxu1 %vm330_vm1, %v7007_v32 }
  0xcc   : > { %5103 = vmatmul.mubr.msk.f32.gmra.mxu0 %vm330_vm1, %v5696_v39 }
  0xcd   : > { %5053 = vmatmul.mubr.msk.f32.gmra.mxu1 %vm330_vm1, %v7008_v33  ;;  %5105 = vmatprep.mubr.msk.f32.mxu0 %vm330_vm1, %v5702_v5  ;;  %v7018_v5 = vld [vmem:[#allocation26_spill] sm:$0xff] }
  0xce   : > { %5055 = vmatprep.mubr.msk.f32.mxu1 %vm330_vm1, %v7009_v34 }
  0xd0   : > { %5106 = vmatmul.mubr.msk.f32.gmra.mxu0 %vm330_vm1, %v5716_v38  ;;  %v7021_v38 = vld [vmem:[#allocation28_spill] sm:$0xff] }
  0xd1   : > { %5056 = vmatmul.mubr.msk.f32.gmra.mxu1 %vm330_vm1, %v7010_v35  ;;  %5108 = vmatprep.mubr.msk.f32.mxu0 %vm330_vm1, %v5722_v0  ;;  %v7016_v0 = vld [vmem:[#allocation24_spill] sm:$0xff] }
  0xd2   : > { %5058 = vmatprep.mubr.msk.f32.mxu1 %vm330_vm1, %v7011_v36 }
  0xd4   : > { %v6075_v41 = vpop.f32.mrf.mxu0  ;;  %5109 = vmatmul.mubr.msk.f32.gmra.mxu0 %vm330_vm1, %v5736_v2 }
  0xd5   : > { %v6077_v43 = vpop.f32.mrf.mxu1  ;;  %5059 = vmatmul.mubr.msk.f32.gmra.mxu1 %vm330_vm1, %v7012_v44  ;;  %5111 = vmatprep.mubr.msk.f32.mxu0 %vm330_vm1, %v5742_v60 }
  0xd6   : > { %5061 = vmatprep.mubr.msk.f32.mxu1 %vm330_vm1, %v7013_v45  ;;  %v6087_v47 = vpop.f32.mrf.mxu0 }
  0xd7   : > { %v6089_v49 = vpop.f32.mrf.mxu1 }
  0xd8   : > { %v6091_v51 = vpop.f32.mrf.mxu0  ;;  %5112 = vmatmul.mubr.msk.f32.gmra.mxu0 %vm330_vm1, %v5756_v62  ;;  %v7017_v62 = vld [vmem:[#allocation25_spill] sm:$0xff] }
  0xd9   : > { %v6093_v53 = vpop.f32.mrf.mxu1  ;;  %5062 = vmatmul.mubr.msk.f32.gmra.mxu1 %vm330_vm1, %v7014_v55  ;;  %5114 = vmatprep.mubr.msk.f32.mxu0 %vm330_vm1, %v5762_v56 }
  0xda   : > { %5064 = vmatprep.mubr.msk.f32.mxu1 %vm330_vm1, %v7015_v57  ;;  %v6103_v59 = vpop.f32.mrf.mxu0 }
  0xdb   : > { %v6105_v60 = vpop.f32.mrf.mxu1 }
  0xdc   : > { %v6107_v61 = vpop.f32.mrf.mxu0  ;;  %5115 = vmatmul.mubr.msk.f32.gmra.mxu0 %vm330_vm1, %v5776_v58  ;;  %v7019_v58 = vld [vmem:[#allocation27_spill] sm:$0xff] }
  0xdd   : > { %v6109_v63 = vpop.f32.mrf.mxu1  ;;  %5065 = vmatmul.mubr.msk.f32.gmra.mxu1 %vm330_vm1, %v7016_v0  ;;  %5117 = vmatprep.mubr.msk.f32.mxu0 %vm330_vm1, %v5782_v52 }
  0xde   : > { %5067 = vmatprep.mubr.msk.f32.mxu1 %vm330_vm1, %v7017_v62  ;;  %v6119_v56 = vpop.f32.mrf.mxu0 }
  0xdf   : > { %v6121_v1 = vpop.f32.mrf.mxu1 }
  0xe0   : > { %v6123_v2 = vpop.f32.mrf.mxu0  ;;  %5118 = vmatmul.mubr.msk.f32.gmra.mxu0 %vm330_vm1, %v5796_v54  ;;  %v7022_v54 = vld [vmem:[#allocation29_spill] sm:$0xff] }
  0xe1   : > { %v6125_v3 = vpop.f32.mrf.mxu1  ;;  %5068 = vmatmul.mubr.msk.f32.gmra.mxu1 %vm330_vm1, %v7018_v5  ;;  %5120 = vmatprep.mubr.msk.f32.mxu0 %vm330_vm1, %v5802_v48 }
  0xe2   : > { %5070 = vmatprep.mubr.msk.f32.mxu1 %vm330_vm1, %v7019_v58  ;;  %v6135_v52 = vpop.f32.mrf.mxu0 }
  0xe3   : > { %v6137_v9 = vpop.f32.mrf.mxu1 }
  0xe4   : > { %v6139_v10 = vpop.f32.mrf.mxu0  ;;  %5121 = vmatmul.mubr.msk.f32.gmra.mxu0 %vm330_vm1, %v5816_v50  ;;  %v7025_v50 = vld [vmem:[#allocation31_spill] sm:$0xff] }
  0xe5   : > { %v6141_v37 = vpop.f32.mrf.mxu1  ;;  %5071 = vmatmul.mubr.msk.f32.gmra.mxu1 %vm330_vm1, %v7021_v38  ;;  %5123 = vmatprep.mubr.msk.f32.mxu0 %vm330_vm1, %v5822_v42 }
  0xe6   : > { %7020 = vst [vmem:[#allocation3_spill] sm:$0xff] %v6141_v37  ;;  %5073 = vmatprep.mubr.msk.f32.mxu1 %vm330_vm1, %v7022_v54  ;;  %v6151_v48 = vpop.f32.mrf.mxu0  ;;  %v7029_v37 = vld [vmem:[#allocation32_spill] sm:$0xff] }
  0xe7   : > { %v6153_v39 = vpop.f32.mrf.mxu1 }
  0xe8   : > { %7023 = vst [vmem:[#allocation4_spill] sm:$0xff] %v6153_v39  ;;  %v6155_v7 = vpop.f32.mrf.mxu0  ;;  %5124 = vmatmul.mubr.msk.f32.gmra.mxu0 %vm330_vm1, %v5836_v46  ;;  %v6187_v46 = vld [vmem:[%s5347_s28 + $0x18a] sm:$0xff] }
  0xe9   : > { %v6157_v12 = vpop.f32.mrf.mxu1  ;;  %5074 = vmatmul.mubr.msk.f32.gmra.mxu1 %vm330_vm1, %v5819_v40  ;;  %5126 = vmatprep.mubr.msk.f32.mxu0 %vm330_vm1, %v5980_v4  ;;  %7030 = vst [vmem:[#allocation9_spill] sm:$0xff] %v6187_v46  ;;  %v4313_v4 = vld [vmem:[%s5347_s28 + $0x1a0] sm:$0xff] }
  0xea   : > { %7024 = vst [vmem:[#allocation5_spill] sm:$0xff] %v6157_v12  ;;  %5076 = vmatprep.mubr.msk.f32.mxu1 %vm330_vm1, %v7025_v50  ;;  %v6167_v42 = vpop.f32.mrf.mxu0 }
  0xeb   : > { %v6169_v14 = vpop.f32.mrf.mxu1 }
  0xec   : > { %7026 = vst [vmem:[#allocation6_spill] sm:$0xff] %v6169_v14  ;;  %v6175_v12 = vpop.f32.mrf.mxu0  ;;  %5127 = vmatmul.mubr.msk.f32.gmra.mxu0 %vm330_vm1, %v5994_v8 }
  0xed   : > { %v6177_v39 = vpop.f32.mrf.mxu1  ;;  %5077 = vmatmul.mubr.msk.f32.gmra.mxu1 %vm330_vm1, %v7029_v37  ;;  %5129 = vmatprep.mubr.msk.f32.mxu0 %vm330_vm1, %v4312_v6 }
  0xee   : > { %7028 = vst [vmem:[#allocation8_spill] sm:$0xff] %v6177_v39  ;;  %5079 = vmatprep.mubr.msk.f32.mxu1 %vm330_vm1, %v6172_v11  ;;  %v6190_v50 = vpop.f32.mrf.mxu0 }
  0xef   : > { %v6192_v14 = vpop.f32.mrf.mxu1 }
  0xf0   : > { %7031 = vst [vmem:[#allocation10_spill] sm:$0xff] %v6192_v14  ;;  %v6194_v40 = vpop.f32.mrf.mxu0  ;;  %5130 = vmatmul.mubr.msk.f32.gmra.mxu0 %vm330_vm1, %v4313_v4 }
  0xf1   : > { %v6196_v39 = vpop.f32.mrf.mxu1  ;;  %5080 = vmatmul.mubr.msk.f32.gmra.mxu1 %vm330_vm1, %v6187_v46  ;;  %5184 = vmatprep.mubr.msk.f32.mxu0 %vm330_vm1, %v6997_v16 }
  0xf2   : > { %7032 = vst [vmem:[#allocation11_spill] sm:$0xff] %v6196_v39  ;;  %5134 = vmatprep.mubr.msk.f32.mxu1 %vm330_vm1, %v5392_v13  ;;  %v6205_v6 = vpop.f32.mrf.mxu0 }
  0xf3   : > { %v6207_v8 = vpop.f32.mrf.mxu1 }
  0xf4   : > { %7033 = vst [vmem:[#allocation12_spill] sm:$0xff] %v6207_v8  ;;  %v4886_v14 = vpop.f32.mrf.mxu0  ;;  %5185 = vmatmul.mubr.msk.f32.vlgmr.msra.gmra.mxu0 %vm330_vm1, %v6998_v18 }
  0xf5   : > { %v4836_v37 = vpop.f32.mrf.mxu1  ;;  %5135 = vmatmul.mubr.msk.f32.vlgmr.msra.gmra.mxu1 %vm330_vm1, %v5410_v15  ;;  %5187 = vmatprep.mubr.msk.f32.mxu0 %vm330_vm1, %v6999_v20 }
  0xf6   : > { %v827_v4 = vadd.f32 %v4836_v37, %v6075_v41  ;;  %5137 = vmatprep.mubr.msk.f32.mxu1 %vm330_vm1, %v5416_v17  ;;  %v1179_v16 = vpop.f32.mrf.mxu0  ;;  %v4358_v37 = vld [vmem:[%s5347_s28 + $0xa9] sm:$0xff] }
  0xf7   : > { %v821_v13 = vpop.f32.mrf.mxu1 }
  0xf8   : > { %v6218_v39 = vadd.f32 %v4886_v14, %v827_v4  ;;  %v822_v8 = vadd.f32 %v821_v13, %v6087_v47  ;;  %v4889_v11 = vpop.f32.mrf.mxu0  ;;  %5188 = vmatmul.mubr.msk.f32.gmra.mxu0 %vm330_vm1, %v7000_v22 }
  0xf9   : > { %v4839_v46 = vpop.f32.mrf.mxu1  ;;  %5138 = vmatmul.mubr.msk.f32.gmra.mxu1 %vm330_vm1, %v5430_v19  ;;  %5190 = vmatprep.mubr.msk.f32.mxu0 %vm330_vm1, %v7001_v24 }
  0xfa   : > { %v6225_v15 = vadd.f32 %v1179_v16, %v822_v8  ;;  %v837_v17 = vadd.f32 %v4839_v46, %v6091_v51  ;;  %5140 = vmatprep.mubr.msk.f32.mxu1 %vm330_vm1, %v5436_v21  ;;  %v1189_v20 = vpop.f32.mrf.mxu0  ;;  %v4356_v51 = vld [vmem:[%s5347_s28 + $0x91] sm:$0xff] }
  0xfb   : > { %v831_v18 = vpop.f32.mrf.mxu1  ;;  %v4359_v16 = vld [vmem:[%s5347_s28 + $0xb1] sm:$0xff] }
  0xfc   : > { %v6232_v41 = vadd.f32 %v4889_v11, %v837_v17  ;;  %v832_v19 = vadd.f32 %v831_v18, %v6103_v59  ;;  %v4892_v14 = vpop.f32.mrf.mxu0  ;;  %5191 = vmatmul.mubr.msk.f32.gmra.mxu0 %vm330_vm1, %v7002_v26  ;;  %v4360_v18 = vld [vmem:[%s5347_s28 + $0xc1] sm:$0xff] }
  0xfd   : > { %v4842_v47 = vpop.f32.mrf.mxu1  ;;  %5141 = vmatmul.mubr.msk.f32.gmra.mxu1 %vm330_vm1, %v5450_v23  ;;  %5193 = vmatprep.mubr.msk.f32.mxu0 %vm330_vm1, %v7003_v28 }
  0xfe   : > { %v6239_v22 = vadd.f32 %v1189_v20, %v832_v19  ;;  %v847_v21 = vadd.f32 %v4842_v47, %v6107_v61  ;;  %5143 = vmatprep.mubr.msk.f32.mxu1 %vm330_vm1, %v5456_v25  ;;  %v1199_v24 = vpop.f32.mrf.mxu0  ;;  %v4357_v61 = vld [vmem:[%s5347_s28 + $0x99] sm:$0xff] }
  0xff   : > { %v841_v11 = vpop.f32.mrf.mxu1 }
 0x100   : > { %v6247_v59 = vadd.f32 %v4892_v14, %v847_v21  ;;  %v842_v23 = vadd.f32 %v841_v11, %v6119_v56  ;;  %v4895_v46 = vpop.f32.mrf.mxu0  ;;  %5194 = vmatmul.mubr.msk.f32.gmra.mxu0 %vm330_vm1, %v7004_v29  ;;  %v4361_v14 = vld [vmem:[%s5347_s28 + $0xc9] sm:$0xff]  ;;  %v4362_v11 = vld [vmem:[%s5347_s28 + $0xd9] sm:$0xff] }
 0x101   : > { %v4845_v26 = vpop.f32.mrf.mxu1  ;;  %5144 = vmatmul.mubr.msk.f32.gmra.mxu1 %vm330_vm1, %v5470_v27  ;;  %5196 = vmatprep.mubr.msk.f32.mxu0 %vm330_vm1, %v7005_v30 }
 0x102   : > { %v6254_v25 = vadd.f32 %v1199_v24, %v842_v23  ;;  %v857_v28 = vadd.f32 %v4845_v26, %v6123_v2  ;;  %5146 = vmatprep.mubr.msk.f32.mxu1 %vm330_vm1, %v4356_v51  ;;  %v1209_v8 = vpop.f32.mrf.mxu0  ;;  %v4363_v26 = vld [vmem:[%s5347_s28 + $0xe1] sm:$0xff] }
 0x103   : > { %v851_v56 = vpop.f32.mrf.mxu1 }
 0x104   : > { %v6262_v4 = vadd.f32 %v4895_v46, %v857_v28  ;;  %v852_v27 = vadd.f32 %v851_v56, %v6135_v52  ;;  %v4898_v13 = vpop.f32.mrf.mxu0  ;;  %5197 = vmatmul.mubr.msk.f32.gmra.mxu0 %vm330_vm1, %v7006_v31  ;;  %v4364_v28 = vld [vmem:[%s5347_s28 + $0xf1] sm:$0xff] }
 0x105   : > { %v4848_v29 = vpop.f32.mrf.mxu1  ;;  %5147 = vmatmul.mubr.msk.f32.gmra.mxu1 %vm330_vm1, %v4357_v61  ;;  %5199 = vmatprep.mubr.msk.f32.mxu0 %vm330_vm1, %v7007_v32 }
 0x106   : > { %v6268_v2 = vadd.f32 %v1209_v8, %v852_v27  ;;  %v867_v30 = vadd.f32 %v4848_v29, %v6139_v10  ;;  %5149 = vmatprep.mubr.msk.f32.mxu1 %vm330_vm1, %v4358_v37  ;;  %v1219_v52 = vpop.f32.mrf.mxu0  ;;  %v4365_v37 = vld [vmem:[%s5347_s28 + $0xf9] sm:$0xff]  ;;  %v4366_v29 = vld [vmem:[%s5347_s28 + $0x109] sm:$0xff] }
 0x107   : > { %v861_v17 = vpop.f32.mrf.mxu1 }
 0x108   : > { %v6276_v20 = vadd.f32 %v4898_v13, %v867_v30  ;;  %v862_v19 = vadd.f32 %v861_v17, %v6151_v48  ;;  %v4901_v47 = vpop.f32.mrf.mxu0  ;;  %5200 = vmatmul.mubr.msk.f32.gmra.mxu0 %vm330_vm1, %v7008_v33  ;;  %v4367_v17 = vld [vmem:[%s5347_s28 + $0x111] sm:$0xff] }
 0x109   : > { %v4851_v31 = vpop.f32.mrf.mxu1  ;;  %5150 = vmatmul.mubr.msk.f32.gmra.mxu1 %vm330_vm1, %v4359_v16  ;;  %5202 = vmatprep.mubr.msk.f32.mxu0 %vm330_vm1, %v7009_v34 }
 0x10a   : > { %v6282_v10 = vadd.f32 %v1219_v52, %v862_v19  ;;  %v877_v32 = vadd.f32 %v4851_v31, %v6155_v7  ;;  %5152 = vmatprep.mubr.msk.f32.mxu1 %vm330_vm1, %v4360_v18  ;;  %v1229_v48 = vpop.f32.mrf.mxu0  ;;  %v4368_v18 = vld [vmem:[%s5347_s28 + $0x121] sm:$0xff] }
 0x10b   : > { %v871_v21 = vpop.f32.mrf.mxu1 }
 0x10c   : > { %v6290_v24 = vadd.f32 %v4901_v47, %v877_v32  ;;  %v872_v51 = vadd.f32 %v871_v21, %v6167_v42  ;;  %v4904_v23 = vpop.f32.mrf.mxu0  ;;  %5203 = vmatmul.mubr.msk.f32.gmra.mxu0 %vm330_vm1, %v7010_v35  ;;  %v4369_v32 = vld [vmem:[%s5347_s28 + $0x129] sm:$0xff]  ;;  %v4370_v21 = vld [vmem:[%s5347_s28 + $0x139] sm:$0xff] }
 0x10d   : > { %v4854_v33 = vpop.f32.mrf.mxu1  ;;  %5153 = vmatmul.mubr.msk.f32.gmra.mxu1 %vm330_vm1, %v4361_v14  ;;  %5205 = vmatprep.mubr.msk.f32.mxu0 %vm330_vm1, %v7011_v36 }
 0x10e   : > { %v6296_v7 = vadd.f32 %v1229_v48, %v872_v51  ;;  %v887_v34 = vadd.f32 %v4854_v33, %v6175_v12  ;;  %5155 = vmatprep.mubr.msk.f32.mxu1 %vm330_vm1, %v4362_v11  ;;  %v1239_v42 = vpop.f32.mrf.mxu0  ;;  %v4371_v33 = vld [vmem:[%s5347_s28 + $0x141] sm:$0xff] }
 0x10f   : > { %v881_v46 = vpop.f32.mrf.mxu1 }
 0x110   : > { %v6304_v61 = vadd.f32 %v4904_v23, %v887_v34  ;;  %v882_v56 = vadd.f32 %v881_v46, %v6190_v50  ;;  %v4907_v8 = vpop.f32.mrf.mxu0  ;;  %5206 = vmatmul.mubr.msk.f32.gmra.mxu0 %vm330_vm1, %v7012_v44  ;;  %v4372_v34 = vld [vmem:[%s5347_s28 + $0x151] sm:$0xff] }
 0x111   : > { %v4857_v35 = vpop.f32.mrf.mxu1  ;;  %5156 = vmatmul.mubr.msk.f32.gmra.mxu1 %vm330_vm1, %v4363_v26  ;;  %5208 = vmatprep.mubr.msk.f32.mxu0 %vm330_vm1, %v7013_v45 }
 0x112   : > { %v6310_v12 = vadd.f32 %v1239_v42, %v882_v56  ;;  %v897_v36 = vadd.f32 %v4857_v35, %v6194_v40  ;;  %5158 = vmatprep.mubr.msk.f32.mxu1 %vm330_vm1, %v4364_v28  ;;  %v1249_v50 = vpop.f32.mrf.mxu0  ;;  %v4373_v28 = vld [vmem:[%s5347_s28 + $0x159] sm:$0xff]  ;;  %v4374_v35 = vld [vmem:[%s5347_s28 + $0x169] sm:$0xff] }
 0x113   : > { %v891_v27 = vpop.f32.mrf.mxu1 }
 0x114   : > { %v6318_v13 = vadd.f32 %v4907_v8, %v897_v36  ;;  %v892_v30 = vadd.f32 %v891_v27, %v6205_v6  ;;  %v4910_v16 = vpop.f32.mrf.mxu0  ;;  %5209 = vmatmul.mubr.msk.f32.gmra.mxu0 %vm330_vm1, %v7014_v55  ;;  %v4440_v8 = vld [vmem:[%s5347_s28 + $0x16a] sm:$0xff] }
 0x115   : > { %v4860_v44 = vpop.f32.mrf.mxu1  ;;  %5159 = vmatmul.mubr.msk.f32.gmra.mxu1 %vm330_vm1, %v4365_v37  ;;  %5211 = vmatprep.mubr.msk.f32.mxu0 %vm330_vm1, %v7015_v57 }
 0x116   : > { %v6324_v40 = vadd.f32 %v1249_v50, %v892_v30  ;;  %v907_v45 = vadd.f32 %v4860_v44, %v6077_v43  ;;  %5161 = vmatprep.mubr.msk.f32.mxu1 %vm330_vm1, %v4366_v29  ;;  %v1259_v6 = vpop.f32.mrf.mxu0  ;;  %v4375_v30 = vld [vmem:[%s5347_s28 + $0x171] sm:$0xff] }
 0x117   : > { %v901_v52 = vpop.f32.mrf.mxu1  ;;  %v4441_v44 = vld [vmem:[%s5347_s28 + $0x172] sm:$0xff] }
 0x118   : > { %v6332_v19 = vadd.f32 %v4910_v16, %v907_v45  ;;  %v902_v31 = vadd.f32 %v901_v52, %v6089_v49  ;;  %v4913_v47 = vpop.f32.mrf.mxu0  ;;  %5212 = vmatmul.mubr.msk.f32.gmra.mxu0 %vm330_vm1, %v7016_v0 }
 0x119   : > { %v4863_v55 = vpop.f32.mrf.mxu1  ;;  %5162 = vmatmul.mubr.msk.f32.gmra.mxu1 %vm330_vm1, %v4367_v17  ;;  %5214 = vmatprep.mubr.msk.f32.mxu0 %vm330_vm1, %v7017_v62  ;;  %v7036_v17 = vld [vmem:[#allocation4_spill] sm:$0xff] }
 0x11a   : > { %v6338_v43 = vadd.f32 %v1259_v6, %v902_v31  ;;  %v917_v57 = vadd.f32 %v4863_v55, %v6093_v53  ;;  %5164 = vmatprep.mubr.msk.f32.mxu1 %vm330_vm1, %v4368_v18  ;;  %v1269_v49 = vpop.f32.mrf.mxu0  ;;  %v7037_v55 = vld [vmem:[#allocation5_spill] sm:$0xff] }
 0x11b   : > { %v911_v14 = vpop.f32.mrf.mxu1 }
 0x11c   : > { %v6346_v48 = vadd.f32 %v4913_v47, %v917_v57  ;;  %v912_v11 = vadd.f32 %v911_v14, %v6105_v60  ;;  %v4916_v51 = vpop.f32.mrf.mxu0  ;;  %5215 = vmatmul.mubr.msk.f32.gmra.mxu0 %vm330_vm1, %v7018_v5  ;;  %v7038_v57 = vld [vmem:[#allocation33_spill] sm:$0xff] }
 0x11d   : > { %v4866_v0 = vpop.f32.mrf.mxu1  ;;  %5165 = vmatmul.mubr.msk.f32.gmra.mxu1 %vm330_vm1, %v4369_v32  ;;  %5217 = vmatprep.mubr.msk.f32.mxu0 %vm330_vm1, %v7019_v58  ;;  %v7039_v32 = vld [vmem:[#allocation7_spill] sm:$0xff] }
 0x11e   : > { %v6352_v53 = vadd.f32 %v1269_v49, %v912_v11  ;;  %v927_v62 = vadd.f32 %v4866_v0, %v6109_v63  ;;  %5167 = vmatprep.mubr.msk.f32.mxu1 %vm330_vm1, %v4370_v21  ;;  %v1279_v60 = vpop.f32.mrf.mxu0  ;;  %v4378_v21 = vld [vmem:[%s5347_s28 + $0x199] sm:$0xff] }
 0x11f   : > { %v921_v23 = vpop.f32.mrf.mxu1  ;;  %v4444_v11 = vld [vmem:[%s5347_s28 + $0x19a] sm:$0xff] }
 0x120   : > { %v6360_v26 = vadd.f32 %v4916_v51, %v927_v62  ;;  %v922_v5 = vadd.f32 %v921_v23, %v6121_v1  ;;  %v4919_v42 = vpop.f32.mrf.mxu0  ;;  %5218 = vmatmul.mubr.msk.f32.gmra.mxu0 %vm330_vm1, %v7021_v38  ;;  %v7040_v51 = vld [vmem:[#allocation6_spill] sm:$0xff] }
 0x121   : > { %v4869_v46 = vpop.f32.mrf.mxu1  ;;  %5168 = vmatmul.mubr.msk.f32.gmra.mxu1 %vm330_vm1, %v4371_v33  ;;  %5220 = vmatprep.mubr.msk.f32.mxu0 %vm330_vm1, %v7022_v54  ;;  %v7035_v54 = vld [vmem:[#allocation3_spill] sm:$0xff] }
 0x122   : > { %v6366_v63 = vadd.f32 %v1279_v60, %v922_v5  ;;  %v937_v58 = vadd.f32 %v4869_v46, %v6125_v3  ;;  %5170 = vmatprep.mubr.msk.f32.mxu1 %vm330_vm1, %v4372_v34  ;;  %v1289_v56 = vpop.f32.mrf.mxu0  ;;  %v7034_v3 = vld [vmem:[#allocation30_spill] sm:$0xff]  ;;  %v7042_v34 = vld [vmem:[#allocation9_spill] sm:$0xff]  ;;  %v7043_v46 = vld [vmem:[#allocation8_spill] sm:$0xff] }
 0x123   : > { %v931_v1 = vpop.f32.mrf.mxu1  ;;  %v7041_v60 = vld [vmem:[#allocation2_spill] sm:$0xff] }
 0x124   : > { %v6375_v36 = vadd.f32 %v4919_v42, %v937_v58  ;;  %v932_v38 = vadd.f32 %v931_v1, %v6137_v9  ;;  %v4922_v27 = vpop.f32.mrf.mxu0  ;;  %5221 = vmatmul.mubr.msk.f32.gmra.mxu0 %vm330_vm1, %v7034_v3  ;;  %v4379_v58 = vld [vmem:[%s5347_s28 + $0x1a1] sm:$0xff] }
 0x125   : > { %v4872_v37 = vpop.f32.mrf.mxu1  ;;  %5171 = vmatmul.mubr.msk.f32.gmra.mxu1 %vm330_vm1, %v4373_v28  ;;  %5223 = vmatprep.mubr.msk.f32.mxu0 %vm330_vm1, %v4440_v8  ;;  %v4445_v28 = vld [vmem:[%s5347_s28 + $0x1a2] sm:$0xff] }
 0x126   : > { %v6381_v50 = vadd.f32 %v1289_v56, %v932_v38  ;;  %v947_v29 = vadd.f32 %v4872_v37, %v7035_v54  ;;  %5173 = vmatprep.mubr.msk.f32.mxu1 %vm330_vm1, %v4374_v35  ;;  %v1299_v16 = vpop.f32.mrf.mxu0  ;;  %v7044_v8 = vld [vmem:[#allocation10_spill] sm:$0xff]  ;;  %v7045_v54 = vld [vmem:[#allocation11_spill] sm:$0xff] }
 0x127   : > { %v941_v9 = vpop.f32.mrf.mxu1 }
 0x128   : > { %v6388_v45 = vadd.f32 %v4922_v27, %v947_v29  ;;  %v942_v52 = vadd.f32 %v941_v9, %v7036_v17  ;;  %v4925_v18 = vpop.f32.mrf.mxu0  ;;  %5224 = vmatmul.mubr.msk.f32.gmra.mxu0 %vm330_vm1, %v4441_v44 }
 0x129   : > { %v4875_v6 = vpop.f32.mrf.mxu1  ;;  %5174 = vmatmul.mubr.msk.f32.gmra.mxu1 %vm330_vm1, %v4375_v30  ;;  %5226 = vmatprep.mubr.msk.f32.mxu0 %vm330_vm1, %v7039_v32 }
 0x12a   : > { %v6393_v31 = vadd.f32 %v1299_v16, %v942_v52  ;;  %v957_v47 = vadd.f32 %v4875_v6, %v7037_v55  ;;  %5176 = vmatprep.mubr.msk.f32.mxu1 %vm330_vm1, %v7038_v57  ;;  %v1309_v49 = vpop.f32.mrf.mxu0  ;;  %v7046_v16 = vld [vmem:[#allocation12_spill] sm:$0xff] }
 0x12b   : > { %v951_v14 = vpop.f32.mrf.mxu1 }
 0x12c   : > { %v6402_v0 = vadd.f32 %v4925_v18, %v957_v47  ;;  %v952_v62 = vadd.f32 %v951_v14, %v7040_v51  ;;  %v4928_v23 = vpop.f32.mrf.mxu0  ;;  %5227 = vmatmul.mubr.msk.f32.gmra.mxu0 %vm330_vm1, %v7042_v34 }
 0x12d   : > { %v4878_v33 = vpop.f32.mrf.mxu1  ;;  %5177 = vmatmul.mubr.msk.f32.gmra.mxu1 %vm330_vm1, %v7041_v60  ;;  %5229 = vmatprep.mubr.msk.f32.mxu0 %vm330_vm1, %v4444_v11 }
 0x12e   : > { %v6409_v5 = vadd.f32 %v1309_v49, %v952_v62  ;;  %v967_v42 = vadd.f32 %v4878_v33, %v7043_v46  ;;  %5179 = vmatprep.mubr.msk.f32.mxu1 %vm330_vm1, %v4378_v21  ;;  %v1319_v56 = vpop.f32.mrf.mxu0 }
 0x12f   : > { %v961_v1 = vpop.f32.mrf.mxu1 }
 0x130   : > { %v6416_v35 = vadd.f32 %v4928_v23, %v967_v42  ;;  %v962_v38 = vadd.f32 %v961_v1, %v7044_v8  ;;  %v4931_v27 = vpop.f32.mrf.mxu0  ;;  %5230 = vmatmul.mubr.msk.f32.gmra.mxu0 %vm330_vm1, %v4445_v28 }
 0x131   : > { %v4881_v37 = vpop.f32.mrf.mxu1  ;;  %5180 = vmatmul.mubr.msk.f32.gmra.mxu1 %vm330_vm1, %v4379_v58 }
 0x132   : > { %v6421_v3 = vadd.f32 %v1319_v56, %v962_v38  ;;  %v977_v29 = vadd.f32 %v4881_v37, %v7045_v54  ;;  %v1329_v44 = vpop.f32.mrf.mxu0 }
 0x133   : > { %v971_v30 = vpop.f32.mrf.mxu1 }
 0x134   : > { %v6424_v9 = vadd.f32 %v4931_v27, %v977_v29  ;;  %v972_v17 = vadd.f32 %v971_v30, %v7046_v16  ;;  %v4986_v6 = vpop.f32.mrf.mxu0 }
 0x135   : > { %v4936_v52 = vpop.f32.mrf.mxu1 }
 0x136   : > { %v6427_v18 = vadd.f32 %v1329_v44, %v972_v17  ;;  %v1730_v55 = vadd.f32 %v4936_v52, %v6218_v39  ;;  %v1960_v57 = vpop.f32.mrf.mxu0 }
 0x137   : > { %v1570_v47 = vpop.f32.mrf.mxu1 }
 0x138   : > { %v6430_v32 = vadd.f32 %v4986_v6, %v1730_v55  ;;  %v1729_v14 = vadd.f32 %v1570_v47, %v6225_v15  ;;  %v4989_v21 = vpop.f32.mrf.mxu0 }
 0x139   : > { %v4939_v49 = vpop.f32.mrf.mxu1 }
 0x13a   : > { %v6433_v11 = vadd.f32 %v1960_v57, %v1729_v14  ;;  %v1732_v51 = vadd.f32 %v4939_v49, %v6232_v41  ;;  %v1970_v33 = vpop.f32.mrf.mxu0 }
 0x13b   : > { %v1580_v62 = vpop.f32.mrf.mxu1 }
 0x13c   : > { %v6436_v23 = vadd.f32 %v4989_v21, %v1732_v51  ;;  %v1731_v60 = vadd.f32 %v1580_v62, %v6239_v22  ;;  %v4992_v39 = vpop.f32.mrf.mxu0 }
 0x13d   : > { %v4942_v34 = vpop.f32.mrf.mxu1 }
 0x13e   : > { %v6439_v46 = vadd.f32 %v1970_v33, %v1731_v60  ;;  %v1734_v42 = vadd.f32 %v4942_v34, %v6247_v59  ;;  %v1980_v15 = vpop.f32.mrf.mxu0 }
 0x13f   : > { %v1590_v58 = vpop.f32.mrf.mxu1 }
 0x140   : > { %v6442_v28 = vadd.f32 %v4992_v39, %v1734_v42  ;;  %v1733_v1 = vadd.f32 %v1590_v58, %v6254_v25  ;;  %v4995_v41 = vpop.f32.mrf.mxu0 }
 0x141   : > { %v4945_v56 = vpop.f32.mrf.mxu1 }
 0x142   : > { %v6445_v8 = vadd.f32 %v1980_v15, %v1733_v1  ;;  %v1736_v38 = vadd.f32 %v4945_v56, %v6262_v4  ;;  %v1990_v22 = vpop.f32.mrf.mxu0 }
 0x143   : > { %v1600_v37 = vpop.f32.mrf.mxu1 }
 0x144   : > { %v6448_v27 = vadd.f32 %v4995_v41, %v1736_v38  ;;  %v1735_v54 = vadd.f32 %v1600_v37, %v6268_v2  ;;  %v4998_v59 = vpop.f32.mrf.mxu0 }
 0x145   : > { %v4948_v29 = vpop.f32.mrf.mxu1 }
 0x146   : > { %v6451_v30 = vadd.f32 %v1990_v22, %v1735_v54  ;;  %v1738_v44 = vadd.f32 %v4948_v29, %v6276_v20  ;;  %v2000_v25 = vpop.f32.mrf.mxu0 }
 0x147   : > { %v1610_v16 = vpop.f32.mrf.mxu1 }
 0x148   : > { %v6454_v17 = vadd.f32 %v4998_v59, %v1738_v44  ;;  %v1737_v52 = vadd.f32 %v1610_v16, %v6282_v10  ;;  %v5001_v4 = vpop.f32.mrf.mxu0 }
 0x149   : > { %v4951_v6 = vpop.f32.mrf.mxu1 }
 0x14a   : > { %v6457_v55 = vadd.f32 %v2000_v25, %v1737_v52  ;;  %v1740_v47 = vadd.f32 %v4951_v6, %v6290_v24  ;;  %v2010_v2 = vpop.f32.mrf.mxu0 }
 0x14b   : > { %v1620_v57 = vpop.f32.mrf.mxu1 }
 0x14c   : > { %v6460_v14 = vadd.f32 %v5001_v4, %v1740_v47  ;;  %v1739_v49 = vadd.f32 %v1620_v57, %v6296_v7  ;;  %v5004_v20 = vpop.f32.mrf.mxu0 }
 0x14d   : > { %v4954_v21 = vpop.f32.mrf.mxu1 }
 0x14e   : > { %v6463_v51 = vadd.f32 %v2010_v2, %v1739_v49  ;;  %v1742_v62 = vadd.f32 %v4954_v21, %v6304_v61  ;;  %v2020_v10 = vpop.f32.mrf.mxu0 }
 0x14f   : > { %v1630_v33 = vpop.f32.mrf.mxu1 }
 0x150   : > { %v6466_v60 = vadd.f32 %v5004_v20, %v1742_v62  ;;  %v1741_v34 = vadd.f32 %v1630_v33, %v6310_v12  ;;  %v5007_v24 = vpop.f32.mrf.mxu0 }
 0x151   : > { %v4957_v39 = vpop.f32.mrf.mxu1 }
 0x152   : > { %v6469_v42 = vadd.f32 %v2020_v10, %v1741_v34  ;;  %v1744_v58 = vadd.f32 %v4957_v39, %v6318_v13  ;;  %v2030_v7 = vpop.f32.mrf.mxu0 }
 0x153   : > { %v1640_v15 = vpop.f32.mrf.mxu1 }
 0x154   : > { %v6472_v1 = vadd.f32 %v5007_v24, %v1744_v58  ;;  %v1743_v56 = vadd.f32 %v1640_v15, %v6324_v40  ;;  %v5010_v61 = vpop.f32.mrf.mxu0 }
 0x155   : > { %v4960_v41 = vpop.f32.mrf.mxu1 }
 0x156   : > { %v6475_v38 = vadd.f32 %v2030_v7, %v1743_v56  ;;  %v1746_v37 = vadd.f32 %v4960_v41, %v6332_v19  ;;  %v2040_v12 = vpop.f32.mrf.mxu0 }
 0x157   : > { %v1650_v22 = vpop.f32.mrf.mxu1 }
 0x158   : > { %v6478_v54 = vadd.f32 %v5010_v61, %v1746_v37  ;;  %v1745_v29 = vadd.f32 %v1650_v22, %v6338_v43  ;;  %v5013_v13 = vpop.f32.mrf.mxu0 }
 0x159   : > { %v4963_v59 = vpop.f32.mrf.mxu1 }
 0x15a   : > { %v6481_v44 = vadd.f32 %v2040_v12, %v1745_v29  ;;  %v1748_v16 = vadd.f32 %v4963_v59, %v6346_v48  ;;  %v2050_v40 = vpop.f32.mrf.mxu0 }
 0x15b   : > { %v1660_v25 = vpop.f32.mrf.mxu1 }
 0x15c   : > { %v6484_v52 = vadd.f32 %v5013_v13, %v1748_v16  ;;  %v1747_v6 = vadd.f32 %v1660_v25, %v6352_v53  ;;  %v5016_v19 = vpop.f32.mrf.mxu0 }
 0x15d   : > { %v4966_v4 = vpop.f32.mrf.mxu1 }
 0x15e   : > { %7047 = vst [vmem:[#allocation13_spill] sm:$0xff] %v6484_v52  ;;  %v6487_v47 = vadd.f32 %v2050_v40, %v1747_v6  ;;  %v1750_v57 = vadd.f32 %v4966_v4, %v6360_v26  ;;  %v2060_v43 = vpop.f32.mrf.mxu0 }
 0x15f   : > { %v1670_v2 = vpop.f32.mrf.mxu1 }
 0x160   : > { %7048 = vst [vmem:[#allocation14_spill] sm:$0xff] %v6487_v47  ;;  %v6490_v49 = vadd.f32 %v5016_v19, %v1750_v57  ;;  %v1749_v21 = vadd.f32 %v1670_v2, %v6366_v63  ;;  %v5019_v48 = vpop.f32.mrf.mxu0 }
 0x161   : > { %v4969_v20 = vpop.f32.mrf.mxu1 }
 0x162   : > { %7049 = vst [vmem:[#allocation15_spill] sm:$0xff] %v6490_v49  ;;  %v6493_v62 = vadd.f32 %v2060_v43, %v1749_v21  ;;  %v1752_v33 = vadd.f32 %v4969_v20, %v6375_v36  ;;  %v2070_v53 = vpop.f32.mrf.mxu0 }
 0x163   : > { %v1680_v10 = vpop.f32.mrf.mxu1 }
 0x164   : > { %7050 = vst [vmem:[#allocation16_spill] sm:$0xff] %v6493_v62  ;;  %v6496_v34 = vadd.f32 %v5019_v48, %v1752_v33  ;;  %v1751_v39 = vadd.f32 %v1680_v10, %v6381_v50  ;;  %v5022_v26 = vpop.f32.mrf.mxu0 }
 0x165   : > { %v4972_v24 = vpop.f32.mrf.mxu1 }
 0x166   : > { %7051 = vst [vmem:[#allocation17_spill] sm:$0xff] %v6496_v34  ;;  %v6499_v58 = vadd.f32 %v2070_v53, %v1751_v39  ;;  %v1754_v15 = vadd.f32 %v4972_v24, %v6388_v45  ;;  %v2080_v63 = vpop.f32.mrf.mxu0 }
 0x167   : > { %v1690_v7 = vpop.f32.mrf.mxu1 }
 0x168   : > { %7052 = vst [vmem:[#allocation18_spill] sm:$0xff] %v6499_v58  ;;  %v6502_v56 = vadd.f32 %v5022_v26, %v1754_v15  ;;  %v1753_v41 = vadd.f32 %v1690_v7, %v6393_v31  ;;  %v5025_v36 = vpop.f32.mrf.mxu0 }
 0x169   : > { %v4975_v61 = vpop.f32.mrf.mxu1 }
 0x16a   : > { %7053 = vst [vmem:[#allocation19_spill] sm:$0xff] %v6502_v56  ;;  %v6505_v37 = vadd.f32 %v2080_v63, %v1753_v41  ;;  %v1756_v22 = vadd.f32 %v4975_v61, %v6402_v0  ;;  %v2090_v50 = vpop.f32.mrf.mxu0 }
 0x16b   : > { %v1700_v12 = vpop.f32.mrf.mxu1 }
 0x16c   : > { %7054 = vst [vmem:[#allocation20_spill] sm:$0xff] %v6505_v37  ;;  %v6508_v29 = vadd.f32 %v5025_v36, %v1756_v22  ;;  %v1755_v59 = vadd.f32 %v1700_v12, %v6409_v5  ;;  %v5028_v45 = vpop.f32.mrf.mxu0 }
 0x16d   : > { %v4978_v13 = vpop.f32.mrf.mxu1 }
 0x16e   : > { %7055 = vst [vmem:[#allocation21_spill] sm:$0xff] %v6508_v29  ;;  %v6511_v16 = vadd.f32 %v2090_v50, %v1755_v59  ;;  %v1758_v25 = vadd.f32 %v4978_v13, %v6416_v35  ;;  %v2100_v31 = vpop.f32.mrf.mxu0 }
 0x16f   : > { %v1710_v40 = vpop.f32.mrf.mxu1 }
 0x170   : > { %7056 = vst [vmem:[#allocation22_spill] sm:$0xff] %v6511_v16  ;;  %v6514_v6 = vadd.f32 %v5028_v45, %v1758_v25  ;;  %v1757_v4 = vadd.f32 %v1710_v40, %v6421_v3  ;;  %v5031_v0 = vpop.f32.mrf.mxu0 }
 0x171   : > { %v4981_v19 = vpop.f32.mrf.mxu1 }
 0x172   : > { %7057 = vst [vmem:[#allocation23_spill] sm:$0xff] %v6514_v6  ;;  %v6517_v57 = vadd.f32 %v2100_v31, %v1757_v4  ;;  %v1760_v2 = vadd.f32 %v4981_v19, %v6424_v9  ;;  %v2110_v5 = vpop.f32.mrf.mxu0 }
 0x173   : > { %v1720_v43 = vpop.f32.mrf.mxu1 }
 0x174   : > { %7058 = vst [vmem:[#allocation24_spill] sm:$0xff] %v6517_v57  ;;  %v6520_v21 = vadd.f32 %v5031_v0, %v1760_v2  ;;  %v1759_v20 = vadd.f32 %v1720_v43, %v6427_v18  ;;  %v6523_v35 = vpop.f32.mrf.mxu0 }
 0x175   : > { %v5036_v48 = vpop.f32.mrf.mxu1 }
 0x176   : > { %7059 = vst [vmem:[#allocation25_spill] sm:$0xff] %v6520_v21  ;;  %v6525_v33 = vadd.f32 %v2110_v5, %v1759_v20  ;;  %v6527_v53 = vpop.f32.mrf.mxu0 }
 0x177   : > { %v2350_v10 = vpop.f32.mrf.mxu1 }
 0x178   : > { %7060 = vst [vmem:[#allocation26_spill] sm:$0xff] %v6525_v33  ;;  %v6531_v39 = vpop.f32.mrf.mxu0 }
 0x179   : > { %v6529_v3 = vpop.f32.mrf.mxu1 }
 0x17a   : > { %v6535_v9 = vpop.f32.mrf.mxu0 }
 0x17b   : > { %v6533_v24 = vpop.f32.mrf.mxu1 }
 0x17c   : > { %v6539_v15 = vpop.f32.mrf.mxu0 }
 0x17d   : > { %v6537_v26 = vpop.f32.mrf.mxu1 }
 0x17e   : > { %v6543_v7 = vpop.f32.mrf.mxu0 }
 0x17f   : > { %v6541_v18 = vpop.f32.mrf.mxu1 }
 0x180   : > { %v6547_v41 = vpop.f32.mrf.mxu0 }
 0x181   : > { %v6545_v63 = vpop.f32.mrf.mxu1 }
 0x182   : > { %v6551_v36 = vpop.f32.mrf.mxu0 }
 0x183   : > { %v6549_v61 = vpop.f32.mrf.mxu1 }
 0x184   : > { %v6555_v12 = vpop.f32.mrf.mxu0 }
 0x185   : > { %v6553_v22 = vpop.f32.mrf.mxu1 }
 0x186   : > { %v6559_v59 = vpop.f32.mrf.mxu0 }
 0x187   : > { %v6557_v50 = vpop.f32.mrf.mxu1 }
 0x188   : > { %v6563_v45 = vpop.f32.mrf.mxu0 }
 0x189   : > { %v6561_v13 = vpop.f32.mrf.mxu1 }
 0x18a   : > { %v6567_v40 = vpop.f32.mrf.mxu0 }
 0x18b   : > { %v6565_v25 = vpop.f32.mrf.mxu1 }
 0x18c   : > { %v6571_v4 = vpop.f32.mrf.mxu0 }
 0x18d   : > { %v6569_v31 = vpop.f32.mrf.mxu1 }
 0x18e   : > { %v6575_v0 = vpop.f32.mrf.mxu0 }
 0x18f   : > { %v6573_v19 = vpop.f32.mrf.mxu1 }
 0x190   : > { %v6579_v43 = vpop.f32.mrf.mxu0 }
 0x191   : > { %v6577_v2 = vpop.f32.mrf.mxu1 }
 0x192   : > { %v6583_v20 = vpop.f32.mrf.mxu0 }
 0x193   : > { %v6581_v5 = vpop.f32.mrf.mxu1 }
 0x194   : > { %v6587_v21 = vpop.f32.mrf.mxu0 }
 0x195   : > { %v6585_v33 = vpop.f32.mrf.mxu1 }
 0x196   : > { %v6591_v6 = vpop.f32.mrf.mxu0 }
 0x197   : > { %v6589_v57 = vpop.f32.mrf.mxu1  ;;  %7061 = vst [vmem:[#allocation27_spill] sm:$0xff] %v6591_v6 }
 0x198   : > { %v6595_v29 = vpop.f32.mrf.mxu0 }
 0x199   : > { %v6593_v16 = vpop.f32.mrf.mxu1  ;;  %7063 = vst [vmem:[#allocation29_spill] sm:$0xff] %v6595_v29 }
 0x19a   : > { %7062 = vst [vmem:[#allocation28_spill] sm:$0xff] %v6593_v16  ;;  %v6599_v56 = vpop.f32.mrf.mxu0 }
 0x19b   : > { %v6597_v37 = vpop.f32.mrf.mxu1  ;;  %7065 = vst [vmem:[#allocation32_spill] sm:$0xff] %v6599_v56 }
 0x19c   : > { %7064 = vst [vmem:[#allocation31_spill] sm:$0xff] %v6597_v37  ;;  %v6603_v34 = vpop.f32.mrf.mxu0 }
 0x19d   : > { %v6601_v58 = vpop.f32.mrf.mxu1  ;;  %7067 = vst [vmem:[#allocation3_spill] sm:$0xff] %v6603_v34 }
 0x19e   : > { %7066 = vst [vmem:[#allocation30_spill] sm:$0xff] %v6601_v58  ;;  %v6607_v49 = vpop.f32.mrf.mxu0 }
 0x19f   : > { %v6605_v62 = vpop.f32.mrf.mxu1  ;;  %7069 = vst [vmem:[#allocation5_spill] sm:$0xff] %v6607_v49 }
 0x1a0   : > { %7068 = vst [vmem:[#allocation4_spill] sm:$0xff] %v6605_v62  ;;  %v6611_v52 = vpop.f32.mrf.mxu0 }
 0x1a1   : > { %v6609_v47 = vpop.f32.mrf.mxu1  ;;  %7071 = vst [vmem:[#allocation7_spill] sm:$0xff] %v6611_v52 }
 0x1a2   : > { %7070 = vst [vmem:[#allocation33_spill] sm:$0xff] %v6609_v47  ;;  %v6615_v16 = vpop.f32.mrf.mxu0 }
 0x1a3   : > { %v6613_v6 = vpop.f32.mrf.mxu1  ;;  %7073 = vst [vmem:[#allocation2_spill] sm:$0xff] %v6615_v16 }
 0x1a4   : > { %7072 = vst [vmem:[#allocation6_spill] sm:$0xff] %v6613_v6  ;;  %v6619_v37 = vpop.f32.mrf.mxu0 }
 0x1a5   : > { %v6617_v29 = vpop.f32.mrf.mxu1  ;;  %7075 = vst [vmem:[#allocation8_spill] sm:$0xff] %v6619_v37  ;;  %v2510_v37 = vadd.f32 %v5036_v48, %v6430_v32  ;;  %v2511_v48 = vadd.f32 %v6533_v24, %v6439_v46  ;;  %v6670_v46 = vld [vmem:[%s6899_s3] ss:$0 sm:$0xff] }
 0x1a6   : > { %7074 = vst [vmem:[#allocation9_spill] sm:$0xff] %v6617_v29  ;;  %v6623_v58 = vpop.f32.mrf.mxu0 }
 0x1a7   : > { %v6621_v56 = vpop.f32.mrf.mxu1  ;;  %7077 = vst [vmem:[#allocation11_spill] sm:$0xff] %v6623_v58 }
 0x1a8   : > { %7076 = vst [vmem:[#allocation10_spill] sm:$0xff] %v6621_v56  ;;  %v6627_v62 = vpop.f32.mrf.mxu0 }
 0x1a9   : > { %v6625_v34 = vpop.f32.mrf.mxu1  ;;  %7079 = vst [vmem:[#allocation34_spill] sm:$0xff] %v6627_v62  ;;  %v2509_v62 = vadd.f32 %v2350_v10, %v6433_v11  ;;  %v6660_v11 = vld [vmem:[%s6898_s2] ss:$0 sm:$0xff] }
 0x1aa   : > { %7078 = vst [vmem:[#allocation12_spill] sm:$0xff] %v6625_v34  ;;  %v6631_v47 = vpop.f32.mrf.mxu0 }
 0x1ab   : > { %v6629_v49 = vpop.f32.mrf.mxu1  ;;  %7081 = vst [vmem:[#allocation36_spill] sm:$0xff] %v6631_v47  ;;  %v2901_v47 = vadd.f32 %v6523_v35, %v2510_v37  ;;  %v2900_v32 = vadd.f32 %v6527_v53, %v2509_v62  ;;  %v2513_v62 = vadd.f32 %v6541_v18, %v6445_v8  ;;  %v2902_v53 = vadd.f32 %v6535_v9, %v2511_v48 }
 0x1ac   : > { %7080 = vst [vmem:[#allocation35_spill] sm:$0xff] %v6629_v49  ;;  %v6635_v6 = vpop.f32.mrf.mxu0  ;;  %v2515_v48 = vadd.f32 %v6549_v61, %v6451_v30  ;;  %v2518_v30 = vadd.f32 %v6553_v22, %v6454_v17 }
 0x1ad   : > { %v6633_v52 = vpop.f32.mrf.mxu1  ;;  %7083 = vst [vmem:[#allocation38_spill] sm:$0xff] %v6635_v6  ;;  %v2512_v6 = vadd.f32 %v6529_v3, %v6436_v23  ;;  %v2514_v3 = vadd.f32 %v6537_v26, %v6442_v28  ;;  %v2516_v28 = vadd.f32 %v6545_v63, %v6448_v27  ;;  %v2904_v9 = vadd.f32 %v6543_v7, %v2513_v62 }
 0x1ae   : > { %7082 = vst [vmem:[#allocation37_spill] sm:$0xff] %v6633_v52  ;;  %v6639_v29 = vpop.f32.mrf.mxu0 }
 0x1af   : > { %v6637_v16 = vpop.f32.mrf.mxu1  ;;  %v2903_v37 = vadd.f32 %v6531_v39, %v2512_v6  ;;  %v2907_v7 = vadd.f32 %v6547_v41, %v2516_v28 }
 0x1b0   : > { %7084 = vst [vmem:[#allocation39_spill] sm:$0xff] %v6637_v16  ;;  %v6644_v58 = vpop.f32.mrf.mxu0 }
 0x1b1   : > { %v6642_v56 = vpop.f32.mrf.mxu1  ;;  %7085 = vst [vmem:[#allocation40_spill] sm:$0xff] %v6644_v58 }
 0x1b2   : > { %v6649_v49 = vpop.f32.mrf.mxu0 }
 0x1b3   : > { %v6647_v34 = vpop.f32.mrf.mxu1  ;;  %7086 = vst [vmem:[#allocation41_spill] sm:$0xff] %v6649_v49 }
 0x1b4   : > { %v5186_v52 = vpop.f32.mrf.mxu0 }
 0x1b5   : > { %v5136_v16 = vpop.f32.mrf.mxu1 }
 0x1b6   : > { %v3291_v58 = vadd.f32 %v5136_v16, %v2901_v47  ;;  %v3521_v49 = vpop.f32.mrf.mxu0 }
 0x1b7   : > { %v3131_v10 = vpop.f32.mrf.mxu1 }
 0x1b8   : > { %v3681_v35 = vadd.f32 %v5186_v52, %v3291_v58  ;;  %v3290_v23 = vadd.f32 %v3131_v10, %v2900_v32  ;;  %v5189_v16 = vpop.f32.mrf.mxu0  ;;  %v2905_v10 = vadd.f32 %v6539_v15, %v2514_v3 }
 0x1b9   : > { %v5139_v47 = vpop.f32.mrf.mxu1 }
 0x1ba   : > { %v3720_v6 = vmul.f32 %v6660_v11, %v3681_v35  ;;  %v3680_v52 = vadd.f32 %v3521_v49, %v3290_v23  ;;  %v3293_v58 = vadd.f32 %v5139_v47, %v2903_v37  ;;  %v3531_v24 = vpop.f32.mrf.mxu0 }
 0x1bb   : > { %v3141_v39 = vpop.f32.mrf.mxu1 }
 0x1bc   : > { %v3759_v8 = vadd.f32 %v6670_v46, %v3720_v6  ;;  %v3719_v26 = vmul.f32 %v6660_v11, %v3680_v52  ;;  %v3683_v18 = vadd.f32 %v5189_v16, %v3293_v58  ;;  %v3292_v32 = vadd.f32 %v3141_v39, %v2902_v53  ;;  %v5192_v49 = vpop.f32.mrf.mxu0 }
 0x1bd   : > { %v5142_v27 = vpop.f32.mrf.mxu1  ;;  %v2906_v6 = vadd.f32 %v6551_v36, %v2515_v48 }
 0x1be   : > { %v3791_v63 = vmax.f32 %v3759_v8, 0.0  ;;  %v3758_v37 = vadd.f32 %v6670_v46, %v3719_v26  ;;  %v3722_v35 = vmul.f32 %v6660_v11, %v3683_v18  ;;  %v3682_v15 = vadd.f32 %v3531_v24, %v3292_v32  ;;  %v3541_v3 = vpop.f32.mrf.mxu0 }
 0x1bf   : > { %v3295_v61 = vadd.f32 %v5142_v27, %v2905_v10  ;;  %v3151_v23 = vpop.f32.mrf.mxu1  ;;  %v2909_v24 = vadd.f32 %v6555_v12, %v2518_v30  ;;  %v2517_v8 = vadd.f32 %v6557_v50, %v6457_v55  ;;  %v2520_v26 = vadd.f32 %v6561_v13, %v6460_v14 }
 0x1c0   : > { %3824 = vst.msk [vmem:[%s6686_s25 + $0x8] sm:$0xff] %vm3822_vm2, %v3791_v63  ;;  %v3790_v62 = vmax.f32 %v3758_v37, 0.0  ;;  %v3761_v47 = vadd.f32 %v6670_v46, %v3722_v35  ;;  %v3721_v16 = vmul.f32 %v6660_v11, %v3682_v15  ;;  %v3294_v53 = vadd.f32 %v3151_v23, %v2904_v9  ;;  %v5195_v41 = vpop.f32.mrf.mxu0 }
 0x1c1   : > { %v3685_v52 = vadd.f32 %v5192_v49, %v3295_v61  ;;  %v5145_v58 = vpop.f32.mrf.mxu1  ;;  %v2519_v12 = vadd.f32 %v6565_v25, %v6463_v51  ;;  %v2908_v35 = vadd.f32 %v6559_v59, %v2517_v8  ;;  %v2911_v15 = vadd.f32 %v6563_v45, %v2520_v26 }
 0x1c2   : > { %3823 = vst.msk [vmem:[%s6686_s25] sm:$0xff] %vm3822_vm2, %v3790_v62  ;;  %v3793_v17 = vmax.f32 %v3761_v47, 0.0  ;;  %v3760_v22 = vadd.f32 %v6670_v46, %v3721_v16  ;;  %v3684_v28 = vadd.f32 %v3541_v3, %v3294_v53  ;;  %v3297_v39 = vadd.f32 %v5145_v58, %v2907_v7  ;;  %v3551_v32 = vpop.f32.mrf.mxu0 }
 0x1c3   : > { %v3724_v36 = vmul.f32 %v6660_v11, %v3685_v52  ;;  %v3161_v18 = vpop.f32.mrf.mxu1  ;;  %v2522_v51 = vadd.f32 %v6569_v31, %v6466_v60  ;;  %v2910_v47 = vadd.f32 %v6567_v40, %v2519_v12  ;;  %v2521_v59 = vadd.f32 %v6573_v19, %v6469_v42 }
 0x1c4   : > { %3826 = vst.msk [vmem:[%s6686_s25 + $0x18] sm:$0xff] %vm3822_vm2, %v3793_v17  ;;  %v3792_v10 = vmax.f32 %v3760_v22, 0.0  ;;  %v3723_v9 = vmul.f32 %v6660_v11, %v3684_v28  ;;  %v3687_v48 = vadd.f32 %v5195_v41, %v3297_v39  ;;  %v3296_v27 = vadd.f32 %v3161_v18, %v2906_v6  ;;  %v5198_v50 = vpop.f32.mrf.mxu0 }
 0x1c5   : > { %v3763_v49 = vadd.f32 %v6670_v46, %v3724_v36  ;;  %v5148_v55 = vpop.f32.mrf.mxu1  ;;  %v2913_v58 = vadd.f32 %v6571_v4, %v2522_v51  ;;  %v2912_v39 = vadd.f32 %v6575_v0, %v2521_v59  ;;  %v2523_v8 = vadd.f32 %v6581_v5, %v6475_v38  ;;  %v7087_v51 = vld [vmem:[#allocation13_spill] sm:$0xff] }
 0x1c6   : > { %3825 = vst.msk [vmem:[%s6686_s25 + $0x10] sm:$0xff] %vm3822_vm2, %v3792_v10  ;;  %v3762_v14 = vadd.f32 %v6670_v46, %v3723_v9  ;;  %v3726_v13 = vmul.f32 %v6660_v11, %v3687_v48  ;;  %v3686_v63 = vadd.f32 %v3551_v32, %v3296_v27  ;;  %v3299_v37 = vadd.f32 %v5148_v55, %v2909_v24  ;;  %v3561_v30 = vpop.f32.mrf.mxu0 }
 0x1c7   : > { %v3795_v25 = vmax.f32 %v3763_v49, 0.0  ;;  %v3171_v7 = vpop.f32.mrf.mxu1  ;;  %v2524_v24 = vadd.f32 %v6577_v2, %v6472_v1  ;;  %v2526_v0 = vadd.f32 %v6585_v33, %v6478_v54  ;;  %v2914_v55 = vadd.f32 %v6583_v20, %v2523_v8 }
 0x1c8   : > { %v3794_v61 = vmax.f32 %v3762_v14, 0.0  ;;  %v3765_v23 = vadd.f32 %v6670_v46, %v3726_v13  ;;  %v3725_v3 = vmul.f32 %v6660_v11, %v3686_v63  ;;  %v3689_v62 = vadd.f32 %v5198_v50, %v3299_v37  ;;  %v5201_v60 = vpop.f32.mrf.mxu0 }
 0x1c9   : > { %3828 = vst.msk [vmem:[%s6686_s25 + $0x28] sm:$0xff] %vm3822_vm2, %v3795_v25  ;;  %v3298_v45 = vadd.f32 %v3171_v7, %v2908_v35  ;;  %v5151_v16 = vpop.f32.mrf.mxu1  ;;  %v2915_v49 = vadd.f32 %v6579_v43, %v2524_v24  ;;  %v2525_v54 = vadd.f32 %v6589_v57, %v6481_v44  ;;  %v7088_v43 = vld [vmem:[#allocation28_spill] sm:$0xff] }
 0x1ca   : > { %3827 = vst.msk [vmem:[%s6686_s25 + $0x20] sm:$0xff] %vm3822_vm2, %v3794_v61  ;;  %v3797_v31 = vmax.f32 %v3765_v23, 0.0  ;;  %v3764_v53 = vadd.f32 %v6670_v46, %v3725_v3  ;;  %v3728_v6 = vmul.f32 %v6660_v11, %v3689_v62  ;;  %v3301_v52 = vadd.f32 %v5151_v16, %v2911_v15  ;;  %v3571_v17 = vpop.f32.mrf.mxu0  ;;  %v7089_v3 = vld [vmem:[#allocation27_spill] sm:$0xff] }
 0x1cb   : > { %v3688_v40 = vadd.f32 %v3561_v30, %v3298_v45  ;;  %v3181_v41 = vpop.f32.mrf.mxu1  ;;  %v2917_v15 = vadd.f32 %v6587_v21, %v2526_v0  ;;  %v2528_v25 = vadd.f32 %v7088_v43, %v7087_v51  ;;  %v2916_v62 = vadd.f32 %v7089_v3, %v2525_v54  ;;  %v7102_v43 = vld [vmem:[#allocation18_spill] sm:$0xff] }
 0x1cc   : > { %3830 = vst.msk [vmem:[%s6686_s25 + $0x38] sm:$0xff] %vm3822_vm2, %v3797_v31  ;;  %v3796_v42 = vmax.f32 %v3764_v53, 0.0  ;;  %v3767_v19 = vadd.f32 %v6670_v46, %v3728_v6  ;;  %v3691_v22 = vadd.f32 %v5201_v60, %v3301_v52  ;;  %v3300_v28 = vadd.f32 %v3181_v41, %v2910_v47  ;;  %v5204_v36 = vpop.f32.mrf.mxu0  ;;  %v7090_v53 = vld [vmem:[#allocation29_spill] sm:$0xff]  ;;  %v7091_v52 = vld [vmem:[#allocation14_spill] sm:$0xff]  ;;  %v7093_v41 = vld [vmem:[#allocation15_spill] sm:$0xff] }
 0x1cd   : > { %v3727_v4 = vmul.f32 %v6660_v11, %v3688_v40  ;;  %v5154_v26 = vpop.f32.mrf.mxu1  ;;  %v2919_v6 = vadd.f32 %v7090_v53, %v2528_v25  ;;  %v7103_v25 = vld [vmem:[#allocation6_spill] sm:$0xff] }
 0x1ce   : > { %3829 = vst.msk [vmem:[%s6686_s25 + $0x30] sm:$0xff] %vm3822_vm2, %v3796_v42  ;;  %v3799_v18 = vmax.f32 %v3767_v19, 0.0  ;;  %v3730_v32 = vmul.f32 %v6660_v11, %v3691_v22  ;;  %v3690_v10 = vadd.f32 %v3571_v17, %v3300_v28  ;;  %v3303_v9 = vadd.f32 %v5154_v26, %v2913_v58  ;;  %v3581_v2 = vpop.f32.mrf.mxu0  ;;  %v7092_v58 = vld [vmem:[#allocation31_spill] sm:$0xff]  ;;  %v7094_v17 = vld [vmem:[#allocation30_spill] sm:$0xff]  ;;  %v7095_v26 = vld [vmem:[#allocation16_spill] sm:$0xff] }
 0x1cf   : > { %v3766_v48 = vadd.f32 %v6670_v46, %v3727_v4  ;;  %v3191_v1 = vpop.f32.mrf.mxu1  ;;  %v2527_v40 = vadd.f32 %v7092_v58, %v7091_v52  ;;  %v2530_v42 = vadd.f32 %v7094_v17, %v7093_v41  ;;  %v7106_v58 = vld [vmem:[#allocation19_spill] sm:$0xff]  ;;  %v7108_v17 = vld [vmem:[#allocation20_spill] sm:$0xff] }
 0x1d0   : > { %3832 = vst.msk [vmem:[%s6686_s25 + $0x48] sm:$0xff] %vm3822_vm2, %v3799_v18  ;;  %v3769_v38 = vadd.f32 %v6670_v46, %v3730_v32  ;;  %v3729_v5 = vmul.f32 %v6660_v11, %v3690_v10  ;;  %v3693_v27 = vadd.f32 %v5204_v36, %v3303_v9  ;;  %v3302_v12 = vadd.f32 %v3191_v1, %v2912_v39  ;;  %v5207_v14 = vpop.f32.mrf.mxu0  ;;  %v7096_v36 = vld [vmem:[#allocation4_spill] sm:$0xff] }
 0x1d1   : > { %v3798_v33 = vmax.f32 %v3766_v48, 0.0  ;;  %v5157_v50 = vpop.f32.mrf.mxu1  ;;  %v2529_v18 = vadd.f32 %v7096_v36, %v7095_v26  ;;  %v7110_v36 = vld [vmem:[#allocation21_spill] sm:$0xff] }
 0x1d2   : > { %v3801_v13 = vmax.f32 %v3769_v38, 0.0  ;;  %v3768_v63 = vadd.f32 %v6670_v46, %v3729_v5  ;;  %v3732_v37 = vmul.f32 %v6660_v11, %v3693_v27  ;;  %v3692_v35 = vadd.f32 %v3581_v2, %v3302_v12  ;;  %v3591_v44 = vpop.f32.mrf.mxu0  ;;  %v7097_v38 = vld [vmem:[#allocation32_spill] sm:$0xff]  ;;  %v7098_v27 = vld [vmem:[#allocation3_spill] sm:$0xff] }
 0x1d3   : > { %3831 = vst.msk [vmem:[%s6686_s25 + $0x40] sm:$0xff] %vm3822_vm2, %v3798_v33  ;;  %v3305_v20 = vadd.f32 %v5157_v50, %v2915_v49  ;;  %v3201_v7 = vpop.f32.mrf.mxu1  ;;  %v2918_v5 = vadd.f32 %v7097_v38, %v2527_v40  ;;  %v2921_v12 = vadd.f32 %v7098_v27, %v2530_v42  ;;  %v7099_v49 = vld [vmem:[#allocation17_spill] sm:$0xff]  ;;  %v7109_v42 = vld [vmem:[#allocation10_spill] sm:$0xff] }
 0x1d4   : > { %3834 = vst.msk [vmem:[%s6686_s25 + $0x58] sm:$0xff] %vm3822_vm2, %v3801_v13  ;;  %v3800_v57 = vmax.f32 %v3768_v63, 0.0  ;;  %v3771_v30 = vadd.f32 %v6670_v46, %v3732_v37  ;;  %v3731_v61 = vmul.f32 %v6660_v11, %v3692_v35  ;;  %v3304_v23 = vadd.f32 %v3201_v7, %v2914_v55  ;;  %v5210_v59 = vpop.f32.mrf.mxu0  ;;  %v7100_v55 = vld [vmem:[#allocation33_spill] sm:$0xff] }
 0x1d5   : > { %v3695_v21 = vadd.f32 %v5207_v14, %v3305_v20  ;;  %v5160_v47 = vpop.f32.mrf.mxu1  ;;  %v2532_v54 = vadd.f32 %v7100_v55, %v7099_v49  ;;  %v2531_v20 = vadd.f32 %v7103_v25, %v7102_v43  ;;  %v7107_v40 = vld [vmem:[#allocation9_spill] sm:$0xff]  ;;  %v7114_v55 = vld [vmem:[#allocation22_spill] sm:$0xff]  ;;  %v7117_v25 = vld [vmem:[#allocation23_spill] sm:$0xff] }
 0x1d6   : > { %3833 = vst.msk [vmem:[%s6686_s25 + $0x50] sm:$0xff] %vm3822_vm2, %v3800_v57  ;;  %v3803_v45 = vmax.f32 %v3771_v30, 0.0  ;;  %v3770_v16 = vadd.f32 %v6670_v46, %v3731_v61  ;;  %v3694_v60 = vadd.f32 %v3591_v44, %v3304_v23  ;;  %v3307_v31 = vadd.f32 %v5160_v47, %v2917_v15  ;;  %v3601_v28 = vpop.f32.mrf.mxu0  ;;  %v7101_v15 = vld [vmem:[#allocation5_spill] sm:$0xff] }
 0x1d7   : > { %v3734_v19 = vmul.f32 %v6660_v11, %v3695_v21  ;;  %v3211_v22 = vpop.f32.mrf.mxu1  ;;  %v2920_v51 = vadd.f32 %v7101_v15, %v2529_v18  ;;  %v2534_v41 = vadd.f32 %v7107_v40, %v7106_v58  ;;  %v7111_v18 = vld [vmem:[#allocation12_spill] sm:$0xff] }
 0x1d8   : > { %3836 = vst.msk [vmem:[%s6686_s25 + $0x68] sm:$0xff] %vm3822_vm2, %v3803_v45  ;;  %v3802_v39 = vmax.f32 %v3770_v16, 0.0  ;;  %v3733_v24 = vmul.f32 %v6660_v11, %v3694_v60  ;;  %v3697_v8 = vadd.f32 %v5210_v59, %v3307_v31  ;;  %v3306_v4 = vadd.f32 %v3211_v22, %v2916_v62  ;;  %v5213_v9 = vpop.f32.mrf.mxu0  ;;  %v7104_v62 = vld [vmem:[#allocation7_spill] sm:$0xff]  ;;  %v7121_v40 = vld [vmem:[#allocation24_spill] sm:$0xff] }
 0x1d9   : > { %v3773_v32 = vadd.f32 %v6670_v46, %v3734_v19  ;;  %v5163_v10 = vpop.f32.mrf.mxu1  ;;  %v2923_v21 = vadd.f32 %v7104_v62, %v2532_v54  ;;  %v2533_v19 = vadd.f32 %v7109_v42, %v7108_v17  ;;  %v7115_v54 = vld [vmem:[#allocation35_spill] sm:$0xff]  ;;  %v7123_v42 = vld [vmem:[#allocation25_spill] sm:$0xff] }
 0x1da   : > { %3835 = vst.msk [vmem:[%s6686_s25 + $0x60] sm:$0xff] %vm3822_vm2, %v3802_v39  ;;  %v3772_v0 = vadd.f32 %v6670_v46, %v3733_v24  ;;  %v3736_v48 = vmul.f32 %v6660_v11, %v3697_v8  ;;  %v3696_v1 = vadd.f32 %v3601_v28, %v3306_v4  ;;  %v3309_v2 = vadd.f32 %v5163_v10, %v2919_v6  ;;  %v3611_v14 = vpop.f32.mrf.mxu0  ;;  %v7105_v6 = vld [vmem:[#allocation2_spill] sm:$0xff] }
 0x1db   : > { %v3805_v33 = vmax.f32 %v3773_v32, 0.0  ;;  %v3221_v50 = vpop.f32.mrf.mxu1  ;;  %v2922_v52 = vadd.f32 %v7105_v6, %v2531_v20  ;;  %v2536_v32 = vadd.f32 %v7111_v18, %v7110_v36  ;;  %v7118_v20 = vld [vmem:[#allocation37_spill] sm:$0xff]  ;;  %v7124_v36 = vld [vmem:[#allocation26_spill] sm:$0xff] }
 0x1dc   : > { %v3804_v13 = vmax.f32 %v3772_v0, 0.0  ;;  %v3775_v63 = vadd.f32 %v6670_v46, %v3736_v48  ;;  %v3735_v37 = vmul.f32 %v6660_v11, %v3696_v1  ;;  %v3699_v35 = vadd.f32 %v5213_v9, %v3309_v2  ;;  %v5216_v57 = vpop.f32.mrf.mxu0 }
 0x1dd   : > { %3838 = vst.msk [vmem:[%s6686_s25 + $0x78] sm:$0xff] %vm3822_vm2, %v3805_v33  ;;  %v3308_v7 = vadd.f32 %v3221_v50, %v2918_v5  ;;  %v5166_v44 = vpop.f32.mrf.mxu1  ;;  %v7112_v5 = vld [vmem:[#allocation8_spill] sm:$0xff]  ;;  %v2535_v33 = vadd.f32 %v7115_v54, %v7114_v55  ;;  %v2539_v18 = vadd.f32 %v6647_v34, %v7124_v36 }
 0x1de   : > { %3837 = vst.msk [vmem:[%s6686_s25 + $0x70] sm:$0xff] %vm3822_vm2, %v3804_v13  ;;  %v3807_v30 = vmax.f32 %v3775_v63, 0.0  ;;  %v3774_v61 = vadd.f32 %v6670_v46, %v3735_v37  ;;  %v3738_v23 = vmul.f32 %v6660_v11, %v3699_v35  ;;  %v3311_v3 = vadd.f32 %v5166_v44, %v2921_v12  ;;  %v3621_v45 = vpop.f32.mrf.mxu0  ;;  %v7113_v12 = vld [vmem:[#allocation11_spill] sm:$0xff] }
 0x1df   : > { %v3698_v47 = vadd.f32 %v3611_v14, %v3308_v7  ;;  %v3231_v59 = vpop.f32.mrf.mxu1  ;;  %v2925_v27 = vadd.f32 %v7112_v5, %v2534_v41  ;;  %v2924_v49 = vadd.f32 %v7113_v12, %v2533_v19  ;;  %v2538_v7 = vadd.f32 %v7118_v20, %v7117_v25  ;;  %v7122_v41 = vld [vmem:[#allocation39_spill] sm:$0xff] }
 0x1e0   : > { %3840 = vst.msk [vmem:[%s6686_s25 + $0x88] sm:$0xff] %vm3822_vm2, %v3807_v30  ;;  %v3806_v16 = vmax.f32 %v3774_v61, 0.0  ;;  %v3777_v60 = vadd.f32 %v6670_v46, %v3738_v23  ;;  %v3701_v31 = vadd.f32 %v5216_v57, %v3311_v3  ;;  %v3310_v53 = vadd.f32 %v3231_v59, %v2920_v51  ;;  %v5219_v39 = vpop.f32.mrf.mxu0  ;;  %v7116_v51 = vld [vmem:[#allocation34_spill] sm:$0xff] }
 0x1e1   : > { %v3737_v22 = vmul.f32 %v6660_v11, %v3698_v47  ;;  %v5169_v28 = vpop.f32.mrf.mxu1  ;;  %v2927_v43 = vadd.f32 %v7116_v51, %v2536_v32  ;;  %v2537_v17 = vadd.f32 %v7122_v41, %v7121_v40  ;;  %v2540_v19 = vadd.f32 %v6642_v56, %v7123_v42 }
 0x1e2   : > { %3839 = vst.msk [vmem:[%s6686_s25 + $0x80] sm:$0xff] %vm3822_vm2, %v3806_v16  ;;  %v3809_v24 = vmax.f32 %v3777_v60, 0.0  ;;  %v3740_v8 = vmul.f32 %v6660_v11, %v3701_v31  ;;  %v3700_v4 = vadd.f32 %v3621_v45, %v3310_v53  ;;  %v3313_v26 = vadd.f32 %v5169_v28, %v2923_v21  ;;  %v3631_v0 = vpop.f32.mrf.mxu0  ;;  %v7119_v21 = vld [vmem:[#allocation36_spill] sm:$0xff] }
 0x1e3   : > { %v3776_v10 = vadd.f32 %v6670_v46, %v3737_v22  ;;  %v3241_v9 = vpop.f32.mrf.mxu1  ;;  %v2926_v47 = vadd.f32 %v7119_v21, %v2535_v33 }
 0x1e4   : > { %3842 = vst.msk [vmem:[%s6686_s25 + $0x98] sm:$0xff] %vm3822_vm2, %v3809_v24  ;;  %v3779_v48 = vadd.f32 %v6670_v46, %v3740_v8  ;;  %v3739_v1 = vmul.f32 %v6660_v11, %v3700_v4  ;;  %v3703_v2 = vadd.f32 %v5219_v39, %v3313_v26  ;;  %v3312_v38 = vadd.f32 %v3241_v9, %v2922_v52  ;;  %v5222_v13 = vpop.f32.mrf.mxu0  ;;  %v7120_v52 = vld [vmem:[#allocation38_spill] sm:$0xff] }
 0x1e5   : > { %v3808_v50 = vmax.f32 %v3776_v10, 0.0  ;;  %v5172_v14 = vpop.f32.mrf.mxu1  ;;  %v2929_v58 = vadd.f32 %v7120_v52, %v2538_v7 }
 0x1e6   : > { %v3811_v63 = vmax.f32 %v3779_v48, 0.0  ;;  %v3778_v37 = vadd.f32 %v6670_v46, %v3739_v1  ;;  %v3742_v35 = vmul.f32 %v6660_v11, %v3703_v2  ;;  %v3702_v15 = vadd.f32 %v3631_v0, %v3312_v38  ;;  %v3641_v30 = vpop.f32.mrf.mxu0  ;;  %v7125_v38 = vld [vmem:[#allocation40_spill] sm:$0xff] }
 0x1e7   : > { %3841 = vst.msk [vmem:[%s6686_s25 + $0x90] sm:$0xff] %vm3822_vm2, %v3808_v50  ;;  %v3315_v44 = vadd.f32 %v5172_v14, %v2925_v27  ;;  %v3251_v57 = vpop.f32.mrf.mxu1  ;;  %v2928_v2 = vadd.f32 %v6639_v29, %v2537_v17  ;;  %v2931_v5 = vadd.f32 %v7125_v38, %v2540_v19  ;;  %v7126_v50 = vld [vmem:[#allocation41_spill] sm:$0xff] }
 0x1e8   : > { %3844 = vst.msk [vmem:[%s6686_s25 + $0xa8] sm:$0xff] %vm3822_vm2, %v3811_v63  ;;  %v3810_v61 = vmax.f32 %v3778_v37, 0.0  ;;  %v3781_v23 = vadd.f32 %v6670_v46, %v3742_v35  ;;  %v3741_v3 = vmul.f32 %v6660_v11, %v3702_v15  ;;  %v3314_v62 = vadd.f32 %v3251_v57, %v2924_v49  ;;  %v5225_v16 = vpop.f32.mrf.mxu0 }
 0x1e9   : > { %v3705_v59 = vadd.f32 %v5222_v13, %v3315_v44  ;;  %v5175_v45 = vpop.f32.mrf.mxu1  ;;  %v2930_v14 = vadd.f32 %v7126_v50, %v2539_v18 }
 0x1ea   : > { %3843 = vst.msk [vmem:[%s6686_s25 + $0xa0] sm:$0xff] %vm3822_vm2, %v3810_v61  ;;  %v3813_v60 = vmax.f32 %v3781_v23, 0.0  ;;  %v3780_v31 = vadd.f32 %v6670_v46, %v3741_v3  ;;  %v3704_v53 = vadd.f32 %v3641_v30, %v3314_v62  ;;  %v3317_v6 = vadd.f32 %v5175_v45, %v2927_v43  ;;  %v3651_v39 = vpop.f32.mrf.mxu0 }
 0x1eb   : > { %v3744_v22 = vmul.f32 %v6660_v11, %v3705_v59  ;;  %v3261_v28 = vpop.f32.mrf.mxu1 }
 0x1ec   : > { %3846 = vst.msk [vmem:[%s6686_s25 + $0xb8] sm:$0xff] %vm3822_vm2, %v3813_v60  ;;  %v3812_v24 = vmax.f32 %v3780_v31, 0.0  ;;  %v3743_v8 = vmul.f32 %v6660_v11, %v3704_v53  ;;  %v3707_v4 = vadd.f32 %v5225_v16, %v3317_v6  ;;  %v3316_v26 = vadd.f32 %v3261_v28, %v2926_v47  ;;  %v5228_v9 = vpop.f32.mrf.mxu0 }
 0x1ed   : > { %v3783_v32 = vadd.f32 %v6670_v46, %v3744_v22  ;;  %v5178_v10 = vpop.f32.mrf.mxu1 }
 0x1ee   : > { %3845 = vst.msk [vmem:[%s6686_s25 + $0xb0] sm:$0xff] %vm3822_vm2, %v3812_v24  ;;  %v3782_v56 = vadd.f32 %v6670_v46, %v3743_v8  ;;  %v3746_v0 = vmul.f32 %v6660_v11, %v3707_v4  ;;  %v3706_v48 = vadd.f32 %v3651_v39, %v3316_v26  ;;  %v3319_v1 = vadd.f32 %v5178_v10, %v2929_v58  ;;  %v3661_v12 = vpop.f32.mrf.mxu0 }
 0x1ef   : > { %v3815_v27 = vmax.f32 %v3783_v32, 0.0  ;;  %v3271_v34 = vpop.f32.mrf.mxu1 }
 0x1f0   : > { %v3814_v49 = vmax.f32 %v3782_v56, 0.0  ;;  %v3785_v55 = vadd.f32 %v6670_v46, %v3746_v0  ;;  %v3745_v54 = vmul.f32 %v6660_v11, %v3706_v48  ;;  %v3709_v33 = vadd.f32 %v5228_v9, %v3319_v1  ;;  %v5231_v29 = vpop.f32.mrf.mxu0 }
 0x1f1   : > { %3848 = vst.msk [vmem:[%s6686_s25 + $0xc8] sm:$0xff] %vm3822_vm2, %v3815_v27  ;;  %v3318_v13 = vadd.f32 %v3271_v34, %v2928_v2  ;;  %v5181_v63 = vpop.f32.mrf.mxu1 }
 0x1f2   : > { %3847 = vst.msk [vmem:[%s6686_s25 + $0xc0] sm:$0xff] %vm3822_vm2, %v3814_v49  ;;  %v3817_v37 = vmax.f32 %v3785_v55, 0.0  ;;  %v3784_v35 = vadd.f32 %v6670_v46, %v3745_v54  ;;  %v3748_v15 = vmul.f32 %v6660_v11, %v3709_v33  ;;  %v3321_v51 = vadd.f32 %v5181_v63, %v2931_v5  ;;  %v3671_v61 = vpop.f32.mrf.mxu0 }
 0x1f3   : > { %v3708_v43 = vadd.f32 %v3661_v12, %v3318_v13  ;;  %v3281_v25 = vpop.f32.mrf.mxu1 }
 0x1f4   : > { %3850 = vst.msk [vmem:[%s6686_s25 + $0xd8] sm:$0xff] %vm3822_vm2, %v3817_v37  ;;  %v3816_v20 = vmax.f32 %v3784_v35, 0.0  ;;  %v3787_v7 = vadd.f32 %v6670_v46, %v3748_v15  ;;  %v3711_v44 = vadd.f32 %v5231_v29, %v3321_v51  ;;  %v3320_v57 = vadd.f32 %v3281_v25, %v2930_v14 }
 0x1f5   : > { %v3747_v30 = vmul.f32 %v6660_v11, %v3708_v43 }
 0x1f6   : > { %3849 = vst.msk [vmem:[%s6686_s25 + $0xd0] sm:$0xff] %vm3822_vm2, %v3816_v20  ;;  %v3819_v23 = vmax.f32 %v3787_v7, 0.0  ;;  %v3750_v3 = vmul.f32 %v6660_v11, %v3711_v44  ;;  %v3710_v62 = vadd.f32 %v3671_v61, %v3320_v57 }
 0x1f7   : > { %v3786_v21 = vadd.f32 %v6670_v46, %v3747_v30 }
 0x1f8   : > { %3852 = vst.msk [vmem:[%s6686_s25 + $0xe8] sm:$0xff] %vm3822_vm2, %v3819_v23  ;;  %v3789_v47 = vadd.f32 %v6670_v46, %v3750_v3  ;;  %v3749_v59 = vmul.f32 %v6660_v11, %v3710_v62 }
 0x1f9   : > { %v3818_v45 = vmax.f32 %v3786_v21, 0.0 }
 0x1fa   : > { %v3821_v16 = vmax.f32 %v3789_v47, 0.0  ;;  %v3788_v60 = vadd.f32 %v6670_v46, %v3749_v59 }
 0x1fb   : > { %3851 = vst.msk [vmem:[%s6686_s25 + $0xe0] sm:$0xff] %vm3822_vm2, %v3818_v45 }
 0x1fc   : > { %3854 = vst.msk [vmem:[%s6686_s25 + $0xf8] sm:$0xff] %vm3822_vm2, %v3821_v16  ;;  %v3820_v31 = vmax.f32 %v3788_v60, 0.0 }
 0x1fe   : > { %3853 = vst.msk [vmem:[%s6686_s25 + $0xf0] sm:$0xff] %vm3822_vm2, %v3820_v31 }
 0x1ff PF: > { %s14_s17 = sadd.s32 1, %s5281_s17   ;;  %s7127_s15 = smov %s5277_s16 }
 0x200   : > { %p11_p5 = scmp.ge.s32.totalorder %s14_s17, 4   ;;  %s7128_s16 = smov %s7130_s18 }
 0x202   :  { %13 = sbr.rel (!%p11_p5) target bundleno = 2 (0x2), region = 85 }

</bundles_post_ra>
